<compile_context>
chip_gen: v7x
topology: tpu7x:2x2x1
jax: 0.10.0
libtpu: 0.0.40
codegen_flags: <defaults>
</compile_context>

<pallas_src>
import functools
import math

import jax
import jax.numpy as jnp
from jax import lax
from jax.experimental import pallas as pl
from jax.experimental.pallas import tpu as pltpu


# ------------------------------------------------------------------ kernels --

def _noisy_linear_train_kernel(x_ref, wmu_ref, wsig_ref, eps_oc_ref, eps_in_ref,
                               bmu_ref, bsig_ref, eps_or_ref, o_ref, acc_ref):
    """One (TN, TK) weight tile of the noisy linear, accumulating over K."""
    k = pl.program_id(1)

    @pl.when(k == 0)
    def _():
        acc_ref[...] = jnp.zeros_like(acc_ref)

    # Rank-1 epsilon reconstruction on the VPU: (TN,1) * (1,TK) -> (TN,TK).
    w_eps = eps_oc_ref[...] * eps_in_ref[...]
    w = wmu_ref[...] + wsig_ref[...] * w_eps          # (TN, TK)

    # x: (B, TK), w: (TN, TK) -> contract over the shared in_features axis.
    acc_ref[...] += lax.dot_general(
        x_ref[...], w,
        dimension_numbers=(((1,), (1,)), ((), ())),
        preferred_element_type=jnp.float32)

    @pl.when(k == pl.num_programs(1) - 1)
    def _():
        b = bmu_ref[...] + bsig_ref[...] * eps_or_ref[...]   # (1, TN)
        o_ref[...] = (acc_ref[...] + b).astype(o_ref.dtype)


def _linear_eval_kernel(x_ref, wmu_ref, bmu_ref, o_ref, acc_ref):
    """Eval path: plain tiled linear, only mu weights/bias are ever DMA'd."""
    k = pl.program_id(1)

    @pl.when(k == 0)
    def _():
        acc_ref[...] = jnp.zeros_like(acc_ref)

    acc_ref[...] += lax.dot_general(
        x_ref[...], wmu_ref[...],
        dimension_numbers=(((1,), (1,)), ((), ())),
        preferred_element_type=jnp.float32)

    @pl.when(k == pl.num_programs(1) - 1)
    def _():
        o_ref[...] = (acc_ref[...] + bmu_ref[...]).astype(o_ref.dtype)


# ------------------------------------------------------------------ wrapper --

def _pick_tile(dim, target):
    """Largest tile <= target that divides dim and is a multiple of 128,
    otherwise fall back to the full extent (always legal as a block dim)."""
    if dim <= target:
        return dim
    t = target
    while t >= 128:
        if dim % t == 0:
            return t
        t //= 2
    return dim


def noisy_linear(x, weight_mu, weight_sigma, bias_mu, bias_sigma,
                 eps_in, eps_out, *, training=True, tn=256, tk=512):
    """Pallas-TPU NoisyLinear forward.

    x:            (B, in_features) f32
    weight_*:     (out_features, in_features)
    bias_*:       (out_features,)
    eps_in:       (in_features,)   -- factorized noise (weight_epsilon = outer(eps_out, eps_in))
    eps_out:      (out_features,)  -- also the bias epsilon
    """
    B, in_f = x.shape
    out_f, _ = weight_mu.shape

    tn = _pick_tile(out_f, tn)
    tk = _pick_tile(in_f, tk)
    grid = (out_f // tn, in_f // tk)

    compiler_params = pltpu.CompilerParams(
        dimension_semantics=("parallel", "arbitrary"),
        vmem_limit_bytes=48 * 1024 * 1024,
    )

    # lane-dense (1, out_f) rows for bias-like vectors, (out_f, 1) column for
    # the weight-epsilon reconstruction.
    bmu_row = bias_mu.reshape(1, out_f)
    out_shape = jax.ShapeDtypeStruct((B, out_f), x.dtype)
    out_spec = pl.BlockSpec((B, tn), lambda j, k: (0, j))
    x_spec = pl.BlockSpec((B, tk), lambda j, k: (0, k))
    w_spec = pl.BlockSpec((tn, tk), lambda j, k: (j, k))
    row_n_spec = pl.BlockSpec((1, tn), lambda j, k: (0, j))
    scratch = [pltpu.VMEM((B, tn), jnp.float32)]

    if not training:
        # Inference: only (x, W_mu, b_mu) are streamed.
        return pl.pallas_call(
            _linear_eval_kernel,
            out_shape=out_shape,
            grid_spec=pltpu.PrefetchScalarGridSpec(
                num_scalar_prefetch=0,
                grid=grid,
                in_specs=[x_spec, w_spec, row_n_spec],
                out_specs=out_spec,
                scratch_shapes=scratch),
            compiler_params=compiler_params,
        )(x, weight_mu, bmu_row)

    bsig_row = bias_sigma.reshape(1, out_f)
    eps_out_col = eps_out.reshape(out_f, 1)
    eps_out_row = eps_out.reshape(1, out_f)
    eps_in_row = eps_in.reshape(1, in_f)

    return pl.pallas_call(
        _noisy_linear_train_kernel,
        out_shape=out_shape,
        grid_spec=pltpu.PrefetchScalarGridSpec(
            num_scalar_prefetch=0,
            grid=grid,
            in_specs=[
                x_spec,                                          # x
                w_spec,                                          # weight_mu
                w_spec,                                          # weight_sigma
                pl.BlockSpec((tn, 1), lambda j, k: (j, 0)),      # eps_out column
                pl.BlockSpec((1, tk), lambda j, k: (0, k)),      # eps_in row
                row_n_spec,                                      # bias_mu
                row_n_spec,                                      # bias_sigma
                row_n_spec,                                      # eps_out row (bias eps)
            ],
            out_specs=out_spec,
            scratch_shapes=scratch),
        compiler_params=compiler_params,
    )(x, weight_mu, weight_sigma, eps_out_col, eps_in_row,
      bmu_row, bsig_row, eps_out_row)


# -------------------------------------------------------- params / reference --

def _scale_noise(key, size):
    # torch: x = randn(size); x.sign() * sqrt(|x|)
    x = jax.random.normal(key, (size,), dtype=jnp.float32)
    return jnp.sign(x) * jnp.sqrt(jnp.abs(x))


def init_noisy_linear_params(key, in_features, out_features, std_init=0.1):
    k_wmu, k_bmu, k_ein, k_eout = jax.random.split(key, 4)
    mu_range = 1.0 / math.sqrt(in_features)

    weight_mu = jax.random.uniform(k_wmu, (out_features, in_features),
                                   minval=-mu_range, maxval=mu_range,
                                   dtype=jnp.float32)
    weight_sigma = jnp.full((out_features, in_features),
                            std_init / math.sqrt(in_features), dtype=jnp.float32)
    bias_mu = jax.random.uniform(k_bmu, (out_features,),
                                 minval=-mu_range, maxval=mu_range,
                                 dtype=jnp.float32)
    bias_sigma = jnp.full((out_features,),
                          std_init / math.sqrt(out_features), dtype=jnp.float32)

    eps_in = _scale_noise(k_ein, in_features)
    eps_out = _scale_noise(k_eout, out_features)
    weight_epsilon = jnp.outer(eps_out, eps_in)   # only used by the reference
    bias_epsilon = eps_out

    return dict(weight_mu=weight_mu, weight_sigma=weight_sigma,
                weight_epsilon=weight_epsilon, bias_mu=bias_mu,
                bias_sigma=bias_sigma, bias_epsilon=bias_epsilon,
                eps_in=eps_in, eps_out=eps_out)


def noisy_linear_ref(x, p, training=True):
    if training:
        w = p["weight_mu"] + p["weight_sigma"] * p["weight_epsilon"]
        b = p["bias_mu"] + p["bias_sigma"] * p["bias_epsilon"]
    else:
        w = p["weight_mu"]
        b = p["bias_mu"]
    return x @ w.T + b


def _run_and_check(key_params, key_x, B, in_f, out_f):
    params = init_noisy_linear_params(key_params, in_f, out_f, std_init=0.1)
    x = jax.random.normal(key_x, (B, in_f), dtype=jnp.float32)

    call = functools.partial(
        noisy_linear, x, params["weight_mu"], params["weight_sigma"],
        params["bias_mu"], params["bias_sigma"],
        params["eps_in"], params["eps_out"])

    y_train = call(training=True)
    y_eval = call(training=False)
    jax.block_until_ready(y_train)
    jax.block_until_ready(y_eval)

    ref_train = noisy_linear_ref(x, params, training=True)
    ref_eval = noisy_linear_ref(x, params, training=False)
    assert jnp.allclose(y_train, ref_train, atol=2e-4, rtol=2e-4), \
        f"training-mode mismatch at ({B},{in_f},{out_f})"
    assert jnp.allclose(y_eval, ref_eval, atol=2e-4, rtol=2e-4), \
        f"eval-mode mismatch at ({B},{in_f},{out_f})"


if __name__ == "__main__":
    key = jax.random.PRNGKey(0)
    k1, k2, k3, k4 = jax.random.split(key, 4)

    # Lane-aligned case that exercises a real (2, 2) grid of weight tiles.
    _run_and_check(k1, k2, B=8, in_f=512, out_f=256)
    # Small unaligned case (falls back to full-extent blocks, grid=(1, 1)).
    _run_and_check(k3, k4, B=4, in_f=32, out_f=64)

    print("KERNEL_OK")
</pallas_src>

<mosaic_0001>
module attributes {stable_mosaic.version = 11 : i64} {
  func.func @_noisy_linear_train_kernel(%arg0: i32, %arg1: i32, %arg2: memref<8x512xf32, #tpu.memory_space<vmem>>, %arg3: memref<256x512xf32, #tpu.memory_space<vmem>>, %arg4: memref<256x512xf32, #tpu.memory_space<vmem>>, %arg5: memref<256x1xf32, #tpu.memory_space<vmem>>, %arg6: memref<1x512xf32, #tpu.memory_space<vmem>>, %arg7: memref<1x256xf32, #tpu.memory_space<vmem>>, %arg8: memref<1x256xf32, #tpu.memory_space<vmem>>, %arg9: memref<1x256xf32, #tpu.memory_space<vmem>>, %arg10: memref<8x256xf32, #tpu.memory_space<vmem>>, %arg11: memref<8x256xf32, #tpu.memory_space<vmem>>) attributes {dimension_semantics = [#tpu.dimension_semantics<parallel>, #tpu.dimension_semantics<arbitrary>], iteration_bounds = array<i64: 1, 1>, scalar_prefetch = 0 : i64, scratch_operands = 1 : i64, tpu.core_type = #tpu.core_type<tc>, window_params = [{transform_indices = @transform_0, window_bounds = array<i64: 8, 512>}, {transform_indices = @transform_1, window_bounds = array<i64: 256, 512>}, {transform_indices = @transform_2, window_bounds = array<i64: 256, 512>}, {transform_indices = @transform_3, window_bounds = array<i64: 256, 1>}, {transform_indices = @transform_4, window_bounds = array<i64: 1, 512>}, {transform_indices = @transform_5, window_bounds = array<i64: 1, 256>}, {transform_indices = @transform_6, window_bounds = array<i64: 1, 256>}, {transform_indices = @transform_7, window_bounds = array<i64: 1, 256>}, {transform_indices = @transform_8, window_bounds = array<i64: 8, 256>}]} {
    %c0_i32 = arith.constant 0 : i32
    %0 = arith.cmpi eq, %arg1, %c0_i32 : i32
    %1 = arith.extui %0 : i1 to i32
    %c0_i32_0 = arith.constant 0 : i32
    %2 = arith.cmpi ne, %1, %c0_i32_0 : i32
    scf.if %2 {
      %cst_16 = arith.constant 0.000000e+00 : f32
      %20 = vector.broadcast %cst_16 : f32 to vector<8x256xf32>
      %c0_17 = arith.constant 0 : index
      %c0_18 = arith.constant 0 : index
      %21 = vector.load %arg11[%c0_17, %c0_18] : memref<8x256xf32, #tpu.memory_space<vmem>>, vector<8x256xf32>
      tpu.vector_store %arg11[%c0_17, %c0_18], %20 {strides = array<i32>} : memref<8x256xf32, #tpu.memory_space<vmem>>, vector<8x256xf32>,
    } else {
    }
    %c0 = arith.constant 0 : index
    %c0_1 = arith.constant 0 : index
    %3 = vector.load %arg5[%c0, %c0_1] : memref<256x1xf32, #tpu.memory_space<vmem>>, vector<256x1xf32>
    %c0_2 = arith.constant 0 : index
    %c0_3 = arith.constant 0 : index
    %4 = vector.load %arg6[%c0_2, %c0_3] : memref<1x512xf32, #tpu.memory_space<vmem>>, vector<1x512xf32>
    %5 = vector.broadcast %3 : vector<256x1xf32> to vector<256x512xf32>
    %6 = vector.broadcast %4 : vector<1x512xf32> to vector<256x512xf32>
    %7 = arith.mulf %5, %6 : vector<256x512xf32>
    %c0_4 = arith.constant 0 : index
    %c0_5 = arith.constant 0 : index
    %8 = vector.load %arg3[%c0_4, %c0_5] : memref<256x512xf32, #tpu.memory_space<vmem>>, vector<256x512xf32>
    %c0_6 = arith.constant 0 : index
    %c0_7 = arith.constant 0 : index
    %9 = vector.load %arg4[%c0_6, %c0_7] : memref<256x512xf32, #tpu.memory_space<vmem>>, vector<256x512xf32>
    %10 = arith.mulf %9, %7 : vector<256x512xf32>
    %11 = arith.addf %8, %10 : vector<256x512xf32>
    %c0_8 = arith.constant 0 : index
    %c0_9 = arith.constant 0 : index
    %12 = vector.load %arg11[%c0_8, %c0_9] : memref<8x256xf32, #tpu.memory_space<vmem>>, vector<8x256xf32>
    %c0_10 = arith.constant 0 : index
    %c0_11 = arith.constant 0 : index
    %13 = vector.load %arg2[%c0_10, %c0_11] : memref<8x512xf32, #tpu.memory_space<vmem>>, vector<8x512xf32>
    %cst = arith.constant dense<0.000000e+00> : vector<8x256xf32>
    %14 = tpu.matmul %13, %11, %cst {dimension_numbers = #tpu.dot_dimension_numbers<[1], [1], [0], [0], [0, 0, 1, 0], [], []>} : vector<8x512xf32>, vector<256x512xf32>, vector<8x256xf32> -> vector<8x256xf32>
    %15 = arith.addf %12, %14 : vector<8x256xf32>
    %c0_12 = arith.constant 0 : index
    %c0_13 = arith.constant 0 : index
    %16 = vector.load %arg11[%c0_12, %c0_13] : memref<8x256xf32, #tpu.memory_space<vmem>>, vector<8x256xf32>
    tpu.vector_store %arg11[%c0_12, %c0_13], %15 {strides = array<i32>} : memref<8x256xf32, #tpu.memory_space<vmem>>, vector<8x256xf32>,
    %c0_i32_14 = arith.constant 0 : i32
    %17 = arith.cmpi eq, %arg1, %c0_i32_14 : i32
    %18 = arith.extui %17 : i1 to i32
    %c0_i32_15 = arith.constant 0 : i32
    %19 = arith.cmpi ne, %18, %c0_i32_15 : i32
    scf.if %19 {
      %c0_16 = arith.constant 0 : index
      %c0_17 = arith.constant 0 : index
      %20 = vector.load %arg7[%c0_16, %c0_17] : memref<1x256xf32, #tpu.memory_space<vmem>>, vector<1x256xf32>
      %c0_18 = arith.constant 0 : index
      %c0_19 = arith.constant 0 : index
      %21 = vector.load %arg8[%c0_18, %c0_19] : memref<1x256xf32, #tpu.memory_space<vmem>>, vector<1x256xf32>
      %c0_20 = arith.constant 0 : index
      %c0_21 = arith.constant 0 : index
      %22 = vector.load %arg9[%c0_20, %c0_21] : memref<1x256xf32, #tpu.memory_space<vmem>>, vector<1x256xf32>
      %23 = arith.mulf %21, %22 : vector<1x256xf32>
      %24 = arith.addf %20, %23 : vector<1x256xf32>
      %c0_22 = arith.constant 0 : index
      %c0_23 = arith.constant 0 : index
      %25 = vector.load %arg11[%c0_22, %c0_23] : memref<8x256xf32, #tpu.memory_space<vmem>>, vector<8x256xf32>
      %26 = vector.broadcast %24 : vector<1x256xf32> to vector<8x256xf32>
      %27 = arith.addf %25, %26 : vector<8x256xf32>
      %c0_24 = arith.constant 0 : index
      %c0_25 = arith.constant 0 : index
      %28 = vector.load %arg10[%c0_24, %c0_25] : memref<8x256xf32, #tpu.memory_space<vmem>>, vector<8x256xf32>
      tpu.vector_store %arg10[%c0_24, %c0_25], %27 {strides = array<i32>} : memref<8x256xf32, #tpu.memory_space<vmem>>, vector<8x256xf32>,
    } else {
    }
    return
  }
  func.func @transform_0(%arg0: i32, %arg1: i32) -> (i32, i32) {
    %c0_i32 = arith.constant 0 : i32
    %c0_i32_0 = arith.constant 0 : i32
    return %c0_i32, %arg1 : i32, i32
  }
  func.func @transform_1(%arg0: i32, %arg1: i32) -> (i32, i32) {
    %c0_i32 = arith.constant 0 : i32
    return %arg0, %arg1 : i32, i32
  }
  func.func @transform_2(%arg0: i32, %arg1: i32) -> (i32, i32) {
    %c0_i32 = arith.constant 0 : i32
    return %arg0, %arg1 : i32, i32
  }
  func.func @transform_3(%arg0: i32, %arg1: i32) -> (i32, i32) {
    %c0_i32 = arith.constant 0 : i32
    %c0_i32_0 = arith.constant 0 : i32
    return %arg0, %c0_i32 : i32, i32
  }
  func.func @transform_4(%arg0: i32, %arg1: i32) -> (i32, i32) {
    %c0_i32 = arith.constant 0 : i32
    %c0_i32_0 = arith.constant 0 : i32
    return %c0_i32, %arg1 : i32, i32
  }
  func.func @transform_5(%arg0: i32, %arg1: i32) -> (i32, i32) {
    %c0_i32 = arith.constant 0 : i32
    %c0_i32_0 = arith.constant 0 : i32
    return %c0_i32, %arg0 : i32, i32
  }
  func.func @transform_6(%arg0: i32, %arg1: i32) -> (i32, i32) {
    %c0_i32 = arith.constant 0 : i32
    %c0_i32_0 = arith.constant 0 : i32
    return %c0_i32, %arg0 : i32, i32
  }
  func.func @transform_7(%arg0: i32, %arg1: i32) -> (i32, i32) {
    %c0_i32 = arith.constant 0 : i32
    %c0_i32_0 = arith.constant 0 : i32
    return %c0_i32, %arg0 : i32, i32
  }
  func.func @transform_8(%arg0: i32, %arg1: i32) -> (i32, i32) {
    %c0_i32 = arith.constant 0 : i32
    %c0_i32_0 = arith.constant 0 : i32
    return %c0_i32, %arg0 : i32, i32
  }
}

</mosaic_0001>

<bundles_post_ra>
// kernel: tpu_custom_call.1
= control target key start
LH: loop header
LB: loop body
LE: loop exit
PB: predicated region body
PF: predicated region fallthrough
CT: control target
= control target key end

     0   :  { %13 = vsyncpa [#allocation4], 0  ;;  %s1786_s0 = inlined_call_operand.vmem [shape: f32[8,512], index: 0, kind: input, shape index: {}]   ;;  %s1787_s1 = inlined_call_operand.hbm [shape: f32[256,512], index: 1, kind: input, shape index: {}]   ;;  %s1788_s2 = inlined_call_operand.hbm [shape: f32[256,512], index: 2, kind: input, shape index: {}]   ;;  %s1789_s3 = inlined_call_operand.vmem [shape: f32[256,1], index: 3, kind: input, shape index: {}]   ;;  %s1790_s4 = inlined_call_operand.vmem [shape: f32[1,512], index: 4, kind: input, shape index: {}]   ;;  %s1791_s5 = inlined_call_operand.vmem [shape: f32[1,256], index: 5, kind: input, shape index: {}]   ;;  %s1792_s6 = inlined_call_operand.vmem [shape: f32[1,256], index: 6, kind: input, shape index: {}]   ;;  %s1793_s7 = inlined_call_operand.vmem [shape: f32[1,256], index: 7, kind: input, shape index: {}]   ;;  %s1794_s8 = inlined_call_operand.hbm [shape: f32[8,256], index: 8, kind: output, shape index: {}]  }
   0x1   :  { %14 = vsyncpa [#allocation7], 0 }
   0x2   :  { %15 = vsyncpa [#allocation5], 0  ;;  %s1321_s27 = smov [#allocation3]   ;;  %s1249_s9 = scalar_lea.hbm %s1787_s1, 16384 }
   0x3   :  { %s23_s28 = sshll.u32 %s1321_s27, 4  ;;  %p1250_p0 = scmp.ne.s32.totalorder %s1787_s1, %s1249_s9  ;;  %s24_s28 = int_to_ptr.vmem [resolvable:$true] %s23_s28 }
   0x4   :  { %p1253_p1 = scmp.lt.u32.totalorder %s1249_s9, %s1787_s1 }
   0x6   :  { %p1255_p2 = pnand %p1253_p1, %p1250_p0 }
   0x8   :  { %1258 = shalt.err (!%p1255_p2)
}
   0x9   :  { %s1259_s14 = scalar_lea.vmem %s24_s28, 16384  ;;  %p1264_p4 = scmp.lt.s32.totalorder %s24_s28, %s24_s28 }
   0xa   :  { %p1260_p3 = scmp.ne.s32.totalorder %s24_s28, %s1259_s14  ;;  %p1265_p5 = scmp.lt.s32.totalorder %s1259_s14, %s1259_s14 }
   0xc   :  { %p1266_p6 = por %p1265_p5, %p1264_p4 }
   0xe   :  { %p1267_p7 = pnand %p1266_p6, %p1260_p3 }
  0x10   :  { %1270 = shalt.err (!%p1267_p7)
}
  0x11   :  { %s1322_s15 = smov 512   ;;  %s1323_s16 = smov 32  }
  0x12   :  { %29 = dma.hbm_to_vmem [thread:$0]  %s1787_s1, 16384, %s24_s28, [#allocation4], %s1322_s15, %s1322_s15, %s1323_s16  }
  0x13   :  { %s1324_s19 = smov [#allocation6]   ;;  %s1271_s23 = scalar_lea.hbm %s1788_s2, 16384 }
  0x14   :  { %s35_s20 = sshll.u32 %s1324_s19, 4  ;;  %p1272_p8 = scmp.ne.s32.totalorder %s1788_s2, %s1271_s23  ;;  %s36_s20 = int_to_ptr.vmem [resolvable:$true] %s35_s20 }
  0x15   :  { %p1275_p9 = scmp.lt.u32.totalorder %s1271_s23, %s1788_s2 }
  0x17   :  { %p1277_p10 = pnand %p1275_p9, %p1272_p8 }
  0x19   :  { %1280 = shalt.err (!%p1277_p10)
}
  0x1a   :  { %s1281_s29 = scalar_lea.vmem %s36_s20, 16384  ;;  %p1286_p12 = scmp.lt.s32.totalorder %s36_s20, %s36_s20 }
  0x1b   :  { %p1282_p11 = scmp.ne.s32.totalorder %s36_s20, %s1281_s29  ;;  %p1287_p13 = scmp.lt.s32.totalorder %s1281_s29, %s1281_s29 }
  0x1d   :  { %p1288_p0 = por %p1287_p13, %p1286_p12 }
  0x1f   :  { %p1289_p1 = pnand %p1288_p0, %p1282_p11 }
  0x21   :  { %1292 = shalt.err (!%p1289_p1)
}
  0x22   :  { %41 = dma.hbm_to_vmem [thread:$0]  %s1788_s2, 16384, %s36_s20, [#allocation7], %s1322_s15, %s1322_s15, %s1323_s16  }
  0x23   :  { %1315 = dma.done.wait [#allocation4], 16384  }
  0x24   :  { %1316 = vsyncadd [#allocation4], 4294950912 }
  0x25   :  { %1317 = dma.done.wait [#allocation7], 16384  }
  0x26   :  { %1318 = vsyncadd [#allocation7], 4294950912  ;;  %v1325_v0 = vmov 0   ;;  %v66_v1 = vld [vmem:[%s1789_s3 + $0x10] sm:$0xff]  ;;  %v64_v2 = vld [vmem:[%s1789_s3] sm:$0xff]  ;;  %v258_v33 = vlaneseq }
  0x27   :  { %1248 = vset.pattern.permute.xlu1 %v1325_v0  ;;  %1247 = vset.pattern.permute.xlu0 %v1325_v0  ;;  %v67_v3 = vld [vmem:[%s1789_s3 + $0x18] sm:$0xff]  ;;  %v65_v4 = vld [vmem:[%s1789_s3 + $0x8] sm:$0xff]  ;;  %v68_v6 = vld [vmem:[%s1789_s3 + $0x20] sm:$0xff] }
  0x28   :  { %109 = vperm.xlu1 %1248, %v66_v1   ;;  %99 = vperm.xlu0 %1247, %v64_v2   ;;  %v69_v5 = vld [vmem:[%s1789_s3 + $0x28] sm:$0xff]  ;;  %v71_v7 = vld [vmem:[%s1789_s3 + $0x38] sm:$0xff]  ;;  %v70_v8 = vld [vmem:[%s1789_s3 + $0x30] sm:$0xff]  ;;  %v1492_v34 = vshrl.u32 %v258_v33, 7 }
  0x29   :  { %v73_v9 = vld [vmem:[%s1789_s3 + $0x48] sm:$0xff]  ;;  %v72_v10 = vld [vmem:[%s1789_s3 + $0x40] sm:$0xff]  ;;  %v75_v11 = vld [vmem:[%s1789_s3 + $0x58] sm:$0xff] }
  0x2a   :  { %v74_v12 = vld [vmem:[%s1789_s3 + $0x50] sm:$0xff]  ;;  %v77_v13 = vld [vmem:[%s1789_s3 + $0x68] sm:$0xff]  ;;  %v76_v14 = vld [vmem:[%s1789_s3 + $0x60] sm:$0xff]  ;;  %v264_v35 = vsub.s32 1, %v1492_v34  ;;  %v272_v38 = vsub.s32 3, %v1492_v34  ;;  %v260_v39 = vsub.s32 0, %v1492_v34 }
  0x2b   :  { %v79_v15 = vld [vmem:[%s1789_s3 + $0x78] sm:$0xff]  ;;  %v78_v16 = vld [vmem:[%s1789_s3 + $0x70] sm:$0xff]  ;;  %v81_v17 = vld [vmem:[%s1789_s3 + $0x88] sm:$0xff]  ;;  %v268_v41 = vsub.s32 2, %v1492_v34 }
  0x2c   :  { %114 = vperm.xlu1 %1248, %v67_v3   ;;  %104 = vperm.xlu0 %1247, %v65_v4   ;;  %v80_v18 = vld [vmem:[%s1789_s3 + $0x80] sm:$0xff]  ;;  %v83_v19 = vld [vmem:[%s1789_s3 + $0x98] sm:$0xff]  ;;  %v82_v20 = vld [vmem:[%s1789_s3 + $0x90] sm:$0xff] }
  0x2d   :  { %v85_v21 = vld [vmem:[%s1789_s3 + $0xa8] sm:$0xff]  ;;  %v84_v22 = vld [vmem:[%s1789_s3 + $0xa0] sm:$0xff]  ;;  %v87_v23 = vld [vmem:[%s1789_s3 + $0xb8] sm:$0xff] }
  0x2e   :  { %v86_v24 = vld [vmem:[%s1789_s3 + $0xb0] sm:$0xff]  ;;  %v89_v25 = vld [vmem:[%s1789_s3 + $0xc8] sm:$0xff]  ;;  %v88_v26 = vld [vmem:[%s1789_s3 + $0xc0] sm:$0xff] }
  0x2f   :  { %v91_v27 = vld [vmem:[%s1789_s3 + $0xd8] sm:$0xff]  ;;  %v90_v28 = vld [vmem:[%s1789_s3 + $0xd0] sm:$0xff]  ;;  %v93_v29 = vld [vmem:[%s1789_s3 + $0xe8] sm:$0xff] }
  0x30   :  { %124 = vperm.xlu1 %1248, %v69_v5   ;;  %119 = vperm.xlu0 %1247, %v68_v6   ;;  %v92_v30 = vld [vmem:[%s1789_s3 + $0xe0] sm:$0xff]  ;;  %v95_v31 = vld [vmem:[%s1789_s3 + $0xf8] sm:$0xff]  ;;  %v94_v32 = vld [vmem:[%s1789_s3 + $0xf0] sm:$0xff] }
  0x31   :  { %v96_v37 = vld [vmem:[%s1790_s4] sm:$0xf]  ;;  %v535_v51 = vld [vmem:[#allocation6 + $0x8] sm:$0xff]  ;;  %v537_v53 = vld [vmem:[#allocation6 + $0x18] sm:$0xff] }
  0x32   :  { %v1502_v40 = vrot.slane %v96_v37, %v264_v35  ;;  %v1505_v42 = vrot.slane %v96_v37, %v272_v38  ;;  %v1509_v44 = vrot.slane %v96_v37, %v260_v39  ;;  %v1511_v46 = vrot.slane %v96_v37, %v268_v41  ;;  %v539_v52 = vld [vmem:[#allocation6 + $0x28] sm:$0xff]  ;;  %v541_v54 = vld [vmem:[#allocation6 + $0x38] sm:$0xff]  ;;  %v534_v58 = vld [vmem:[#allocation6] sm:$0xff] }
  0x33   :  { %v407_v61 = vld [vmem:[#allocation3 + $0x8] sm:$0xff]  ;;  %v536_v2 = vld [vmem:[#allocation6 + $0x10] sm:$0xff]  ;;  %v409_v6 = vld [vmem:[#allocation3 + $0x18] sm:$0xff] }
  0x34   :  { %134 = vperm.xlu1 %1248, %v71_v7   ;;  %129 = vperm.xlu0 %1247, %v70_v8   ;;  %v411_v62 = vld [vmem:[#allocation3 + $0x28] sm:$0xff]  ;;  %v413_v7 = vld [vmem:[#allocation3 + $0x38] sm:$0xff]  ;;  %v538_v8 = vld [vmem:[#allocation6 + $0x20] sm:$0xff] }
  0x38   :  { %144 = vperm.xlu1 %1248, %v73_v9   ;;  %139 = vperm.xlu0 %1247, %v72_v10   ;;  %v543_v9 = vld [vmem:[#allocation6 + $0x48] sm:$0xff] }
  0x39   :  { %v547_v10 = vld [vmem:[#allocation6 + $0x68] sm:$0xff] }
  0x3c   :  { %154 = vperm.xlu1 %1248, %v75_v11   ;;  %149 = vperm.xlu0 %1247, %v74_v12   ;;  %v540_v12 = vld [vmem:[#allocation6 + $0x30] sm:$0xff] }
  0x40   :  { %164 = vperm.xlu1 %1248, %v77_v13   ;;  %159 = vperm.xlu0 %1247, %v76_v14   ;;  %v545_v13 = vld [vmem:[#allocation6 + $0x58] sm:$0xff] }
  0x44   :  { %174 = vperm.xlu1 %1248, %v79_v15   ;;  %169 = vperm.xlu0 %1247, %v78_v16  }
  0x48   :  { %184 = vperm.xlu1 %1248, %v81_v17   ;;  %179 = vperm.xlu0 %1247, %v80_v18   ;;  %v406_v17 = vld [vmem:[#allocation3] sm:$0xff] }
  0x49   :  { %v410_v18 = vld [vmem:[#allocation3 + $0x20] sm:$0xff] }
  0x4c   :  { %194 = vperm.xlu1 %1248, %v83_v19   ;;  %189 = vperm.xlu0 %1247, %v82_v20   ;;  %v549_v20 = vld [vmem:[#allocation6 + $0x78] sm:$0xff] }
  0x50   :  { %204 = vperm.xlu1 %1248, %v85_v21   ;;  %199 = vperm.xlu0 %1247, %v84_v22  }
  0x54   :  { %214 = vperm.xlu1 %1248, %v87_v23   ;;  %209 = vperm.xlu0 %1247, %v86_v24  }
  0x58   :  { %224 = vperm.xlu1 %1248, %v89_v25   ;;  %219 = vperm.xlu0 %1247, %v88_v26   ;;  %v408_v25 = vld [vmem:[#allocation3 + $0x10] sm:$0xff] }
  0x59   :  { %v412_v26 = vld [vmem:[#allocation3 + $0x30] sm:$0xff] }
  0x5c   :  { %234 = vperm.xlu1 %1248, %v91_v27   ;;  %229 = vperm.xlu0 %1247, %v90_v28  }
  0x60   :  { %244 = vperm.xlu1 %1248, %v93_v29   ;;  %239 = vperm.xlu0 %1247, %v92_v30  }
  0x64   :  { %254 = vperm.xlu1 %1248, %v95_v31   ;;  %249 = vperm.xlu0 %1247, %v94_v32  }
  0xa7   :  { %v100_v36 = vpop.permute.xlu0 %99  ;;  %v110_v45 = vpop.permute.xlu1 %109 }
  0xa8   :  { %v279_v47 = vmul.f32 %v1502_v40, %v100_v36  ;;  %v281_v48 = vmul.f32 %v1505_v42, %v100_v36  ;;  %v278_v55 = vmul.f32 %v1509_v44, %v100_v36  ;;  %v280_v56 = vmul.f32 %v1511_v46, %v100_v36 }
  0xa9   :  { %v287_v3 = vmul.f32 %v1502_v40, %v110_v45  ;;  %v289_v14 = vmul.f32 %v1505_v42, %v110_v45  ;;  %v286_v27 = vmul.f32 %v1509_v44, %v110_v45 }
  0xaa   :  { %v663_v57 = vmul.f32 %v535_v51, %v279_v47  ;;  %v665_v0 = vmul.f32 %v537_v53, %v281_v48  ;;  %v662_v11 = vmul.f32 %v534_v58, %v278_v55  ;;  %v664_v19 = vmul.f32 %v536_v2, %v280_v56  ;;  %v421_v55 = vld [vmem:[#allocation3 + $0x78] sm:$0xff]  ;;  %v542_v56 = vld [vmem:[#allocation6 + $0x40] sm:$0xff] }
  0xab   :  { %v105_v43 = vpop.permute.xlu0 %104  ;;  %v115_v59 = vpop.permute.xlu1 %114  ;;  %v671_v28 = vmul.f32 %v543_v9, %v287_v3  ;;  %v673_v41 = vmul.f32 %v545_v13, %v289_v14  ;;  %v288_v51 = vmul.f32 %v1511_v46, %v110_v45  ;;  %v548_v45 = vld [vmem:[#allocation6 + $0x70] sm:$0xff]  ;;  %v670_v9 = vmul.f32 %v542_v56, %v286_v27 }
  0xac   :  { %v283_v49 = vmul.f32 %v1502_v40, %v105_v43  ;;  %v285_v50 = vmul.f32 %v1505_v42, %v105_v43  ;;  %v282_v60 = vmul.f32 %v1509_v44, %v105_v43  ;;  %v291_v4 = vmul.f32 %v1502_v40, %v115_v59 }
  0xad   :  { %v284_v5 = vmul.f32 %v1511_v46, %v105_v43  ;;  %v293_v15 = vmul.f32 %v1505_v42, %v115_v59  ;;  %v791_v16 = vadd.f32 %v663_v57, %v407_v61  ;;  %v793_v22 = vadd.f32 %v665_v0, %v409_v6  ;;  %v546_v57 = vld [vmem:[#allocation6 + $0x60] sm:$0xff]  ;;  %v553_v6 = vld [vmem:[#allocation6 + $0x98] sm:$0xff] }
  0xae   :  { %v667_v63 = vmul.f32 %v539_v52, %v283_v49  ;;  %v669_v1 = vmul.f32 %v541_v54, %v285_v50  ;;  %v666_v24 = vmul.f32 %v538_v8, %v282_v60  ;;  %v675_v29 = vmul.f32 %v547_v10, %v291_v4  ;;  %v415_v49 = vld [vmem:[#allocation3 + $0x48] sm:$0xff]  ;;  %v417_v54 = vld [vmem:[#allocation3 + $0x58] sm:$0xff] }
  0xaf   :  { %v668_v30 = vmul.f32 %v540_v12, %v284_v5  ;;  %v1526_v31 = vpop.permute.xlu1 %124  ;;  %v1528_v32 = vpop.permute.xlu0 %119  ;;  %v790_v37 = vadd.f32 %v662_v11, %v406_v17  ;;  %v677_v43 = vmul.f32 %v549_v20, %v293_v15  ;;  %v792_v47 = vadd.f32 %v664_v19, %v408_v25  ;;  %v419_v50 = vld [vmem:[#allocation3 + $0x68] sm:$0xff]  ;;  %v557_v5 = vld [vmem:[#allocation6 + $0xb8] sm:$0xff]  ;;  %v418_v17 = vld [vmem:[#allocation3 + $0x60] sm:$0xff] }
  0xb0   :  { %v795_v21 = vadd.f32 %v667_v63, %v411_v62  ;;  %v797_v23 = vadd.f32 %v669_v1, %v413_v7  ;;  %v794_v38 = vadd.f32 %v666_v24, %v410_v18  ;;  %v290_v52 = vmul.f32 %v1509_v44, %v115_v59  ;;  %v544_v63 = vld [vmem:[#allocation6 + $0x50] sm:$0xff]  ;;  %v551_v1 = vld [vmem:[#allocation6 + $0x88] sm:$0xff]  ;;  %v425_v25 = vld [vmem:[#allocation3 + $0x98] sm:$0xff] }
  0xb1   :  { %v796_v48 = vadd.f32 %v668_v30, %v412_v26  ;;  %v292_v58 = vmul.f32 %v1511_v46, %v115_v59  ;;  %v299_v60 = vmul.f32 %v1502_v40, %v1526_v31  ;;  %v295_v61 = vmul.f32 %v1502_v40, %v1528_v32  ;;  %v555_v59 = vld [vmem:[#allocation6 + $0xa8] sm:$0xff]  ;;  %v429_v26 = vld [vmem:[#allocation3 + $0xb8] sm:$0xff] }
  0xb2   :  { %v1111_v33 = vpack.c.bf16 %v795_v21, %v791_v16  ;;  %v1175_v36 = vpack.c.bf16 %v797_v23, %v793_v22  ;;  %v1113_v53 = vpack.c.bf16 %v794_v38, %v790_v37  ;;  %v301_v0 = vmul.f32 %v1505_v42, %v1526_v31  ;;  %v414_v16 = vld [vmem:[#allocation3 + $0x40] sm:$0xff]  ;;  %v416_v21 = vld [vmem:[#allocation3 + $0x50] sm:$0xff]  ;;  %v423_v23 = vld [vmem:[#allocation3 + $0x88] sm:$0xff] }
  0xb3   :  { %v1177_v62 = vpack.c.bf16 %v796_v48, %v792_v47  ;;  %v297_v2 = vmul.f32 %v1505_v42, %v1528_v32  ;;  %v799_v3 = vadd.f32 %v671_v28, %v415_v49  ;;  %v803_v4 = vadd.f32 %v675_v29, %v419_v50  ;;  %v420_v22 = vld [vmem:[#allocation3 + $0x70] sm:$0xff]  ;;  %v427_v24 = vld [vmem:[#allocation3 + $0xa8] sm:$0xff]  ;;  %v1543_v37 = vpop.permute.xlu0 %129 }
  0xb4   :  { %1112 = vmatprep.subr.bf16.mxu1 %v1111_v33  ;;  %1176 = vmatprep.subr.bf16.mxu0 %v1175_v36  ;;  %v801_v7 = vadd.f32 %v673_v41, %v417_v54  ;;  %v805_v8 = vadd.f32 %v677_v43, %v421_v55  ;;  %v674_v10 = vmul.f32 %v546_v57, %v290_v52  ;;  %v1541_v36 = vpop.permute.xlu1 %134  ;;  %v921_v57 = vld [vmem:[%s1786_s0 + $0x8] sm:$0xff] }
  0xb5   :  { %1114 = vmatpush1.bf16.xpose.msra.mxu1 %v1113_v53  ;;  %1178 = vmatpush1.bf16.xpose.msra.mxu0 %v1177_v62  ;;  %v1115_v11 = vpack.c.bf16 %v803_v4, %v799_v3  ;;  %v672_v12 = vmul.f32 %v544_v63, %v288_v51  ;;  %v676_v13 = vmul.f32 %v548_v45, %v292_v58  ;;  %v554_v51 = vld [vmem:[#allocation6 + $0xa0] sm:$0xff]  ;;  %v556_v58 = vld [vmem:[#allocation6 + $0xb0] sm:$0xff]  ;;  %v563_v63 = vld [vmem:[#allocation6 + $0xe8] sm:$0xff] }
  0xb6   :  { %v679_v14 = vmul.f32 %v551_v1, %v295_v61  ;;  %v1179_v15 = vpack.c.bf16 %v805_v8, %v801_v7  ;;  %v683_v18 = vmul.f32 %v555_v59, %v299_v60  ;;  %v685_v19 = vmul.f32 %v557_v5, %v301_v0  ;;  %v550_v53 = vld [vmem:[#allocation6 + $0x80] sm:$0xff]  ;;  %v552_v60 = vld [vmem:[#allocation6 + $0x90] sm:$0xff]  ;;  %v559_v0 = vld [vmem:[#allocation6 + $0xc8] sm:$0xff]  ;;  %988 = vmatprep.mubr.f32.mxu1 %v921_v57 }
  0xb7   :  { %v681_v20 = vmul.f32 %v553_v6, %v297_v2  ;;  %1116 = vmatprep.subr.bf16.mxu1 %v1115_v11  ;;  %v798_v27 = vadd.f32 %v670_v9, %v414_v16  ;;  %v802_v28 = vadd.f32 %v674_v10, %v418_v17  ;;  %v800_v29 = vadd.f32 %v672_v12, %v416_v21  ;;  %v561_v1 = vld [vmem:[#allocation6 + $0xd8] sm:$0xff]  ;;  %v422_v6 = vld [vmem:[#allocation3 + $0x80] sm:$0xff]  ;;  %v424_v11 = vld [vmem:[#allocation3 + $0x90] sm:$0xff] }
  0xb8   :  { %1180 = vmatprep.subr.bf16.mxu0 %v1179_v15  ;;  %v804_v30 = vadd.f32 %v676_v13, %v420_v22  ;;  %v807_v33 = vadd.f32 %v679_v14, %v423_v23  ;;  %v811_v41 = vadd.f32 %v683_v18, %v427_v24  ;;  %v813_v47 = vadd.f32 %v685_v19, %v429_v26  ;;  %v565_v4 = vld [vmem:[#allocation6 + $0xf8] sm:$0xff]  ;;  %v426_v7 = vld [vmem:[#allocation3 + $0xa0] sm:$0xff]  ;;  %v428_v12 = vld [vmem:[#allocation3 + $0xb0] sm:$0xff]  ;;  %v145_v22 = vpop.permute.xlu1 %144  ;;  %v140_v23 = vpop.permute.xlu0 %139 }
  0xb9   :  { %v1117_v38 = vpack.c.bf16 %v802_v28, %v798_v27  ;;  %v809_v43 = vadd.f32 %v681_v20, %v425_v25  ;;  %v298_v48 = vmul.f32 %v1509_v44, %v1526_v31  ;;  %v294_v49 = vmul.f32 %v1509_v44, %v1528_v32  ;;  %v431_v14 = vld [vmem:[#allocation3 + $0xc8] sm:$0xff]  ;;  %v433_v16 = vld [vmem:[#allocation3 + $0xd8] sm:$0xff] }
  0xba   :  { %v1181_v50 = vpack.c.bf16 %v804_v30, %v800_v29  ;;  %v300_v52 = vmul.f32 %v1511_v46, %v1526_v31  ;;  %v296_v54 = vmul.f32 %v1511_v46, %v1528_v32  ;;  %v1119_v55 = vpack.c.bf16 %v811_v41, %v807_v33  ;;  %v923_v32 = vld [vmem:[%s1786_s0 + $0x18] sm:$0xff]  ;;  %v435_v15 = vld [vmem:[#allocation3 + $0xe8] sm:$0xff] }
  0xbb   :  { %v1183_v56 = vpack.c.bf16 %v813_v47, %v809_v43  ;;  %v307_v61 = vmul.f32 %v1502_v40, %v1541_v36  ;;  %v303_v62 = vmul.f32 %v1502_v40, %v1543_v37  ;;  %v305_v31 = vmul.f32 %v1505_v42, %v1543_v37  ;;  %1059 = vmatprep.mubr.f32.mxu0 %v923_v32  ;;  %v437_v19 = vld [vmem:[#allocation3 + $0xf8] sm:$0xff]  ;;  %v558_v43 = vld [vmem:[#allocation6 + $0xc0] sm:$0xff] }
  0xbc   :  { %v309_v45 = vmul.f32 %v1505_v42, %v1541_v36  ;;  %v682_v2 = vmul.f32 %v554_v51, %v298_v48  ;;  %v678_v3 = vmul.f32 %v550_v53, %v294_v49  ;;  %v684_v59 = vmul.f32 %v556_v58, %v300_v52  ;;  %v564_v49 = vld [vmem:[#allocation6 + $0xf0] sm:$0xff]  ;;  %v569_v57 = vld [vmem:[#allocation6 + $0x118] sm:$0xff]  ;;  %v434_v32 = vld [vmem:[#allocation3 + $0xe0] sm:$0xff] }
  0xbd   :  { %1118 = vmatpush1.bf16.xpose.msra.mxu1 %v1117_v38  ;;  %1182 = vmatpush1.bf16.xpose.msra.mxu0 %v1181_v50  ;;  %v680_v5 = vmul.f32 %v552_v60, %v296_v54  ;;  %v691_v8 = vmul.f32 %v563_v63, %v307_v61  ;;  %v687_v9 = vmul.f32 %v559_v0, %v303_v62  ;;  %v562_v38 = vld [vmem:[#allocation6 + $0xe0] sm:$0xff]  ;;  %v560_v50 = vld [vmem:[#allocation6 + $0xd0] sm:$0xff]  ;;  %v573_v60 = vld [vmem:[#allocation6 + $0x138] sm:$0xff] }
  0xbe   :  { %1120 = vmatprep.subr.bf16.mxu1 %v1119_v55  ;;  %1184 = vmatprep.subr.bf16.mxu0 %v1183_v56  ;;  %v689_v10 = vmul.f32 %v561_v1, %v305_v31  ;;  %v693_v13 = vmul.f32 %v565_v4, %v309_v45  ;;  %v806_v17 = vadd.f32 %v678_v3, %v422_v6  ;;  %v571_v55 = vld [vmem:[#allocation6 + $0x128] sm:$0xff]  ;;  %v430_v31 = vld [vmem:[#allocation3 + $0xc0] sm:$0xff]  ;;  %v432_v1 = vld [vmem:[#allocation3 + $0xd0] sm:$0xff] }
  0xbf   :  { %v810_v18 = vadd.f32 %v682_v2, %v426_v7  ;;  %v808_v20 = vadd.f32 %v680_v5, %v424_v11  ;;  %v812_v21 = vadd.f32 %v684_v59, %v428_v12  ;;  %v815_v25 = vadd.f32 %v687_v9, %v431_v14  ;;  %v436_v2 = vld [vmem:[#allocation3 + $0xf0] sm:$0xff]  ;;  %v439_v4 = vld [vmem:[#allocation3 + $0x108] sm:$0xff]  ;;  %v441_v5 = vld [vmem:[#allocation3 + $0x118] sm:$0xff]  ;;  %v155_v11 = vpop.permute.xlu1 %154  ;;  %v150_v12 = vpop.permute.xlu0 %149 }
  0xc0   :  { %v819_v26 = vadd.f32 %v691_v8, %v435_v15  ;;  %v817_v27 = vadd.f32 %v689_v10, %v433_v16  ;;  %v306_v28 = vmul.f32 %v1509_v44, %v1541_v36  ;;  %v302_v29 = vmul.f32 %v1509_v44, %v1543_v37  ;;  %v443_v59 = vld [vmem:[#allocation3 + $0x128] sm:$0xff]  ;;  %v445_v8 = vld [vmem:[#allocation3 + $0x138] sm:$0xff] }
  0xc1   :  { %v1121_v24 = vpack.c.bf16 %v810_v18, %v806_v17  ;;  %v1185_v30 = vpack.c.bf16 %v812_v21, %v808_v20  ;;  %v821_v33 = vadd.f32 %v693_v13, %v437_v19  ;;  %v308_v41 = vmul.f32 %v1511_v46, %v1541_v36  ;;  %v567_v36 = vld [vmem:[#allocation6 + $0x108] sm:$0xff]  ;;  %v570_v21 = vld [vmem:[#allocation6 + $0x120] sm:$0xff] }
  0xc2   :  { %v304_v47 = vmul.f32 %v1511_v46, %v1543_v37  ;;  %v1123_v48 = vpack.c.bf16 %v819_v26, %v815_v25  ;;  %v315_v51 = vmul.f32 %v1502_v40, %v145_v22  ;;  %v311_v52 = vmul.f32 %v1502_v40, %v140_v23  ;;  %v566_v25 = vld [vmem:[#allocation6 + $0x100] sm:$0xff] }
  0xc3   :  { %v313_v53 = vmul.f32 %v1505_v42, %v140_v23  ;;  %v1187_v54 = vpack.c.bf16 %v821_v33, %v817_v27  ;;  %v317_v56 = vmul.f32 %v1505_v42, %v145_v22  ;;  %v690_v58 = vmul.f32 %v562_v38, %v306_v28  ;;  %v572_v28 = vld [vmem:[#allocation6 + $0x130] sm:$0xff] }
  0xc4   :  { %v686_v37 = vmul.f32 %v558_v43, %v302_v29  ;;  %v692_v61 = vmul.f32 %v564_v49, %v308_v41  ;;  %v688_v62 = vmul.f32 %v560_v50, %v304_v47  ;;  %v699_v63 = vmul.f32 %v571_v55, %v315_v51  ;;  %v568_v29 = vld [vmem:[#allocation6 + $0x110] sm:$0xff]  ;;  %v579_v43 = vld [vmem:[#allocation6 + $0x168] sm:$0xff]  ;;  %v581_v50 = vld [vmem:[#allocation6 + $0x178] sm:$0xff] }
  0xc5   :  { %1122 = vmatpush1.bf16.xpose.msra.mxu1 %v1121_v24  ;;  %1186 = vmatpush1.bf16.xpose.msra.mxu0 %v1185_v30  ;;  %v695_v45 = vmul.f32 %v567_v36, %v311_v52  ;;  %v697_v0 = vmul.f32 %v569_v57, %v313_v53  ;;  %v701_v3 = vmul.f32 %v573_v60, %v317_v56  ;;  %v438_v53 = vld [vmem:[#allocation3 + $0x100] sm:$0xff]  ;;  %v440_v57 = vld [vmem:[#allocation3 + $0x110] sm:$0xff]  ;;  %v447_v60 = vld [vmem:[#allocation3 + $0x148] sm:$0xff] }
  0xc6   :  { %1124 = vmatprep.subr.bf16.mxu1 %v1123_v48  ;;  %1188 = vmatprep.subr.bf16.mxu0 %v1187_v54  ;;  %v814_v6 = vadd.f32 %v686_v37, %v430_v31  ;;  %v818_v7 = vadd.f32 %v690_v58, %v434_v32  ;;  %v816_v9 = vadd.f32 %v688_v62, %v432_v1  ;;  %v575_v48 = vld [vmem:[#allocation6 + $0x148] sm:$0xff]  ;;  %v442_v54 = vld [vmem:[#allocation3 + $0x120] sm:$0xff]  ;;  %v444_v58 = vld [vmem:[#allocation3 + $0x130] sm:$0xff]  ;;  %v165_v1 = vpop.permute.xlu1 %164 }
  0xc7   :  { %v820_v10 = vadd.f32 %v692_v61, %v436_v2  ;;  %v823_v14 = vadd.f32 %v695_v45, %v439_v4  ;;  %v827_v15 = vadd.f32 %v699_v63, %v443_v59  ;;  %v825_v16 = vadd.f32 %v697_v0, %v441_v5  ;;  %v451_v61 = vld [vmem:[#allocation3 + $0x168] sm:$0xff]  ;;  %v449_v62 = vld [vmem:[#allocation3 + $0x158] sm:$0xff]  ;;  %v160_v2 = vpop.permute.xlu0 %159 }
  0xc8   :  { %v1125_v13 = vpack.c.bf16 %v818_v7, %v814_v6  ;;  %v314_v17 = vmul.f32 %v1509_v44, %v145_v22  ;;  %v310_v18 = vmul.f32 %v1509_v44, %v140_v23  ;;  %v829_v20 = vadd.f32 %v701_v3, %v445_v8  ;;  %v453_v63 = vld [vmem:[#allocation3 + $0x178] sm:$0xff] }
  0xc9   :  { %v1189_v19 = vpack.c.bf16 %v820_v10, %v816_v9  ;;  %v316_v24 = vmul.f32 %v1511_v46, %v145_v22  ;;  %v312_v26 = vmul.f32 %v1511_v46, %v140_v23  ;;  %v1127_v27 = vpack.c.bf16 %v827_v15, %v823_v14  ;;  %v577_v22 = vld [vmem:[#allocation6 + $0x158] sm:$0xff]  ;;  %v578_v10 = vld [vmem:[#allocation6 + $0x160] sm:$0xff] }
  0xca   :  { %v323_v30 = vmul.f32 %v1502_v40, %v155_v11  ;;  %v319_v33 = vmul.f32 %v1502_v40, %v150_v12  ;;  %v321_v38 = vmul.f32 %v1505_v42, %v150_v12  ;;  %v1191_v41 = vpack.c.bf16 %v829_v20, %v825_v16  ;;  %v574_v14 = vld [vmem:[#allocation6 + $0x140] sm:$0xff] }
  0xcb   :  { %v325_v47 = vmul.f32 %v1505_v42, %v155_v11  ;;  %v698_v49 = vmul.f32 %v570_v21, %v314_v17  ;;  %v694_v23 = vmul.f32 %v566_v25, %v310_v18  ;;  %v700_v51 = vmul.f32 %v572_v28, %v316_v24  ;;  %v580_v17 = vld [vmem:[#allocation6 + $0x170] sm:$0xff]  ;;  %v587_v25 = vld [vmem:[#allocation6 + $0x1a8] sm:$0xff] }
  0xcc   :  { %v696_v52 = vmul.f32 %v568_v29, %v312_v26  ;;  %v707_v55 = vmul.f32 %v579_v43, %v323_v30  ;;  %v703_v56 = vmul.f32 %v575_v48, %v319_v33  ;;  %v705_v36 = vmul.f32 %v577_v22, %v321_v38  ;;  %v576_v18 = vld [vmem:[#allocation6 + $0x150] sm:$0xff]  ;;  %v589_v29 = vld [vmem:[#allocation6 + $0x1b8] sm:$0xff]  ;;  %v446_v38 = vld [vmem:[#allocation3 + $0x140] sm:$0xff] }
  0xcd   :  { %1126 = vmatpush1.bf16.xpose.msra.mxu1 %v1125_v13  ;;  %1190 = vmatpush1.bf16.xpose.msra.mxu0 %v1189_v19  ;;  %v709_v37 = vmul.f32 %v581_v50, %v325_v47  ;;  %v822_v31 = vadd.f32 %v694_v23, %v438_v53  ;;  %v826_v32 = vadd.f32 %v698_v49, %v442_v54  ;;  %v448_v22 = vld [vmem:[#allocation3 + $0x150] sm:$0xff]  ;;  %v455_v50 = vld [vmem:[#allocation3 + $0x188] sm:$0xff] }
  0xce   :  { %1128 = vmatprep.subr.bf16.mxu1 %v1127_v27  ;;  %1192 = vmatprep.subr.bf16.mxu0 %v1191_v41  ;;  %v824_v45 = vadd.f32 %v696_v52, %v440_v57  ;;  %v828_v0 = vadd.f32 %v700_v51, %v444_v58  ;;  %v831_v4 = vadd.f32 %v703_v56, %v447_v60  ;;  %v583_v27 = vld [vmem:[#allocation6 + $0x188] sm:$0xff]  ;;  %v450_v41 = vld [vmem:[#allocation3 + $0x160] sm:$0xff]  ;;  %v452_v49 = vld [vmem:[#allocation3 + $0x170] sm:$0xff]  ;;  %v175_v56 = vpop.permute.xlu1 %174 }
  0xcf   :  { %v1129_v3 = vpack.c.bf16 %v826_v32, %v822_v31  ;;  %v835_v59 = vadd.f32 %v707_v55, %v451_v61  ;;  %v833_v5 = vadd.f32 %v705_v36, %v449_v62  ;;  %v322_v6 = vmul.f32 %v1509_v44, %v155_v11  ;;  %v459_v51 = vld [vmem:[#allocation3 + $0x1a8] sm:$0xff]  ;;  %v457_v52 = vld [vmem:[#allocation3 + $0x198] sm:$0xff]  ;;  %v170_v36 = vpop.permute.xlu0 %169 }
  0xd0   :  { %v318_v7 = vmul.f32 %v1509_v44, %v150_v12  ;;  %v1193_v8 = vpack.c.bf16 %v828_v0, %v824_v45  ;;  %v837_v9 = vadd.f32 %v709_v37, %v453_v63  ;;  %v324_v13 = vmul.f32 %v1511_v46, %v155_v11  ;;  %v585_v11 = vld [vmem:[#allocation6 + $0x198] sm:$0xff]  ;;  %v586_v0 = vld [vmem:[#allocation6 + $0x1a0] sm:$0xff] }
  0xd1   :  { %v320_v15 = vmul.f32 %v1511_v46, %v150_v12  ;;  %v1131_v16 = vpack.c.bf16 %v835_v59, %v831_v4  ;;  %v331_v19 = vmul.f32 %v1502_v40, %v165_v1  ;;  %v327_v20 = vmul.f32 %v1502_v40, %v160_v2  ;;  %v461_v55 = vld [vmem:[#allocation3 + $0x1b8] sm:$0xff]  ;;  %v582_v4 = vld [vmem:[#allocation6 + $0x180] sm:$0xff] }
  0xd2   :  { %v329_v21 = vmul.f32 %v1505_v42, %v160_v2  ;;  %v1195_v24 = vpack.c.bf16 %v837_v9, %v833_v5  ;;  %v333_v26 = vmul.f32 %v1505_v42, %v165_v1  ;;  %v706_v28 = vmul.f32 %v578_v10, %v322_v6  ;;  %v594_v9 = vld [vmem:[#allocation6 + $0x1e0] sm:$0xff] }
  0xd3   :  { %v702_v12 = vmul.f32 %v574_v14, %v318_v7  ;;  %v708_v30 = vmul.f32 %v580_v17, %v324_v13  ;;  %v704_v33 = vmul.f32 %v576_v18, %v320_v15  ;;  %v715_v43 = vmul.f32 %v587_v25, %v331_v19  ;;  %v588_v7 = vld [vmem:[#allocation6 + $0x1b0] sm:$0xff]  ;;  %v591_v17 = vld [vmem:[#allocation6 + $0x1c8] sm:$0xff]  ;;  %v593_v18 = vld [vmem:[#allocation6 + $0x1d8] sm:$0xff]  ;;  %v185_v25 = vpop.permute.xlu1 %184 }
  0xd4   :  { %v711_v47 = vmul.f32 %v583_v27, %v327_v20  ;;  %v713_v48 = vmul.f32 %v585_v11, %v329_v21  ;;  %v717_v23 = vmul.f32 %v589_v29, %v333_v26  ;;  %v834_v54 = vadd.f32 %v706_v28, %v450_v41  ;;  %v596_v21 = vld [vmem:[#allocation6 + $0x1f0] sm:$0xff]  ;;  %v180_v26 = vpop.permute.xlu0 %179  ;;  %v590_v28 = vld [vmem:[#allocation6 + $0x1c0] sm:$0xff] }
  0xd5   :  { %1130 = vmatpush1.bf16.xpose.msra.mxu1 %v1129_v3  ;;  %1194 = vmatpush1.bf16.xpose.msra.mxu0 %v1193_v8  ;;  %v830_v53 = vadd.f32 %v702_v12, %v446_v38  ;;  %v832_v57 = vadd.f32 %v704_v33, %v448_v22  ;;  %v836_v58 = vadd.f32 %v708_v30, %v452_v49  ;;  %v584_v8 = vld [vmem:[#allocation6 + $0x190] sm:$0xff]  ;;  %v454_v30 = vld [vmem:[#allocation3 + $0x180] sm:$0xff] }
  0xd6   :  { %1132 = vmatprep.subr.bf16.mxu1 %v1131_v16  ;;  %1196 = vmatprep.subr.bf16.mxu0 %v1195_v24  ;;  %v839_v60 = vadd.f32 %v711_v47, %v455_v50  ;;  %v843_v61 = vadd.f32 %v715_v43, %v459_v51  ;;  %v841_v62 = vadd.f32 %v713_v48, %v457_v52  ;;  %v595_v16 = vld [vmem:[#allocation6 + $0x1e8] sm:$0xff]  ;;  %v597_v24 = vld [vmem:[#allocation6 + $0x1f8] sm:$0xff]  ;;  %v458_v33 = vld [vmem:[#allocation3 + $0x1a0] sm:$0xff] }
  0xd7   :  { %v1133_v37 = vpack.c.bf16 %v834_v54, %v830_v53  ;;  %v330_v31 = vmul.f32 %v1509_v44, %v165_v1  ;;  %v326_v32 = vmul.f32 %v1509_v44, %v160_v2  ;;  %v1197_v63 = vpack.c.bf16 %v836_v58, %v832_v57  ;;  %v592_v43 = vld [vmem:[#allocation6 + $0x1d0] sm:$0xff]  ;;  %v463_v53 = vld [vmem:[#allocation3 + $0x1c8] sm:$0xff] }
  0xd8   :  { %v845_v45 = vadd.f32 %v717_v23, %v461_v55  ;;  %v332_v3 = vmul.f32 %v1511_v46, %v165_v1  ;;  %v328_v59 = vmul.f32 %v1511_v46, %v160_v2  ;;  %v338_v5 = vmul.f32 %v1509_v44, %v175_v56  ;;  %v456_v22 = vld [vmem:[#allocation3 + $0x190] sm:$0xff]  ;;  %v467_v54 = vld [vmem:[#allocation3 + $0x1e8] sm:$0xff]  ;;  %v465_v55 = vld [vmem:[#allocation3 + $0x1d8] sm:$0xff] }
  0xd9   :  { %v1135_v6 = vpack.c.bf16 %v843_v61, %v839_v60  ;;  %v339_v10 = vmul.f32 %v1502_v40, %v175_v56  ;;  %v335_v13 = vmul.f32 %v1502_v40, %v170_v36  ;;  %v337_v14 = vmul.f32 %v1505_v42, %v170_v36  ;;  %v460_v49 = vld [vmem:[#allocation3 + $0x1b0] sm:$0xff]  ;;  %v599_v57 = vld [vmem:[#allocation6 + $0x208] sm:$0xff]  ;;  %v469_v61 = vld [vmem:[#allocation3 + $0x1f8] sm:$0xff] }
  0xda   :  { %v1199_v15 = vpack.c.bf16 %v845_v45, %v841_v62  ;;  %v340_v1 = vmul.f32 %v1511_v46, %v175_v56  ;;  %v341_v2 = vmul.f32 %v1505_v42, %v175_v56  ;;  %v714_v19 = vmul.f32 %v586_v0, %v330_v31  ;;  %v603_v56 = vld [vmem:[#allocation6 + $0x228] sm:$0xff] }
  0xdb   :  { %v710_v20 = vmul.f32 %v582_v4, %v326_v32  ;;  %v716_v27 = vmul.f32 %v588_v7, %v332_v3  ;;  %v712_v11 = vmul.f32 %v584_v8, %v328_v59  ;;  %v334_v12 = vmul.f32 %v1509_v44, %v170_v36  ;;  %v605_v32 = vld [vmem:[#allocation6 + $0x238] sm:$0xff]  ;;  %v1611_v8 = vpop.permute.xlu1 %194 }
  0xdc   :  { %v336_v29 = vmul.f32 %v1511_v46, %v170_v36  ;;  %v722_v38 = vmul.f32 %v594_v9, %v338_v5  ;;  %v723_v41 = vmul.f32 %v595_v16, %v339_v10  ;;  %v719_v47 = vmul.f32 %v591_v17, %v335_v13  ;;  %v1613_v9 = vpop.permute.xlu0 %189  ;;  %v464_v16 = vld [vmem:[#allocation3 + $0x1d0] sm:$0xff] }
  0xdd   :  { %1134 = vmatpush1.bf16.xpose.msra.mxu1 %v1133_v37  ;;  %1198 = vmatpush1.bf16.xpose.msra.mxu0 %v1197_v63  ;;  %v721_v48 = vmul.f32 %v593_v18, %v337_v14  ;;  %v724_v23 = vmul.f32 %v596_v21, %v340_v1  ;;  %v725_v50 = vmul.f32 %v597_v24, %v341_v2  ;;  %v601_v63 = vld [vmem:[#allocation6 + $0x218] sm:$0xff]  ;;  %v462_v14 = vld [vmem:[#allocation3 + $0x1c0] sm:$0xff]  ;;  %v475_v21 = vld [vmem:[#allocation3 + $0x228] sm:$0xff] }
  0xde   :  { %1136 = vmatprep.subr.bf16.mxu1 %v1135_v6  ;;  %1200 = vmatprep.subr.bf16.mxu0 %v1199_v15  ;;  %v347_v51 = vmul.f32 %v1502_v40, %v185_v25  ;;  %v343_v52 = vmul.f32 %v1502_v40, %v180_v26  ;;  %v349_v36 = vmul.f32 %v1505_v42, %v185_v25  ;;  %v466_v15 = vld [vmem:[#allocation3 + $0x1e0] sm:$0xff] }
  0xdf   :  { %v345_v58 = vmul.f32 %v1505_v42, %v180_v26  ;;  %v838_v37 = vadd.f32 %v710_v20, %v454_v30  ;;  %v842_v60 = vadd.f32 %v714_v19, %v458_v33  ;;  %v718_v62 = vmul.f32 %v590_v28, %v334_v12  ;;  %v468_v19 = vld [vmem:[#allocation3 + $0x1f0] sm:$0xff]  ;;  %v471_v20 = vld [vmem:[#allocation3 + $0x208] sm:$0xff]  ;;  %v473_v12 = vld [vmem:[#allocation3 + $0x218] sm:$0xff] }
  0xe0   :  { %v720_v31 = vmul.f32 %v592_v43, %v336_v29  ;;  %v840_v45 = vadd.f32 %v712_v11, %v456_v22  ;;  %v844_v0 = vadd.f32 %v716_v27, %v460_v49  ;;  %v847_v4 = vadd.f32 %v719_v47, %v463_v53  ;;  %v477_v29 = vld [vmem:[#allocation3 + $0x238] sm:$0xff]  ;;  %v602_v30 = vld [vmem:[#allocation6 + $0x220] sm:$0xff]  ;;  %v600_v22 = vld [vmem:[#allocation6 + $0x210] sm:$0xff] }
  0xe1   :  { %v1137_v3 = vpack.c.bf16 %v842_v60, %v838_v37  ;;  %v851_v59 = vadd.f32 %v723_v41, %v467_v54  ;;  %v849_v5 = vadd.f32 %v721_v48, %v465_v55  ;;  %v731_v6 = vmul.f32 %v603_v56, %v347_v51  ;;  %v604_v48 = vld [vmem:[#allocation6 + $0x230] sm:$0xff]  ;;  %v607_v54 = vld [vmem:[#allocation6 + $0x248] sm:$0xff] }
  0xe2   :  { %v727_v7 = vmul.f32 %v599_v57, %v343_v52  ;;  %v1201_v10 = vpack.c.bf16 %v844_v0, %v840_v45  ;;  %v853_v13 = vadd.f32 %v725_v50, %v469_v61  ;;  %v346_v1 = vmul.f32 %v1509_v44, %v185_v25  ;;  %v611_v52 = vld [vmem:[#allocation6 + $0x268] sm:$0xff] }
  0xe3   :  { %v733_v2 = vmul.f32 %v605_v32, %v349_v36  ;;  %v729_v17 = vmul.f32 %v601_v63, %v345_v58  ;;  %v1139_v18 = vpack.c.bf16 %v851_v59, %v847_v4  ;;  %v348_v24 = vmul.f32 %v1511_v46, %v185_v25  ;;  %v598_v25 = vld [vmem:[#allocation6 + $0x200] sm:$0xff]  ;;  %v609_v58 = vld [vmem:[#allocation6 + $0x258] sm:$0xff]  ;;  %v1627_v32 = vpop.permute.xlu1 %204  ;;  %v1629_v63 = vpop.permute.xlu0 %199  ;;  %v472_v59 = vld [vmem:[#allocation3 + $0x210] sm:$0xff] }
  0xe4   :  { %v342_v27 = vmul.f32 %v1509_v44, %v180_v26  ;;  %v344_v11 = vmul.f32 %v1511_v46, %v180_v26  ;;  %v1203_v28 = vpack.c.bf16 %v853_v13, %v849_v5  ;;  %v355_v33 = vmul.f32 %v1502_v40, %v1611_v8  ;;  %v474_v4 = vld [vmem:[#allocation3 + $0x220] sm:$0xff]  ;;  %v476_v13 = vld [vmem:[#allocation3 + $0x230] sm:$0xff] }
  0xe5   :  { %1138 = vmatpush1.bf16.xpose.msra.mxu1 %v1137_v3  ;;  %1202 = vmatpush1.bf16.xpose.msra.mxu0 %v1201_v10  ;;  %v351_v41 = vmul.f32 %v1502_v40, %v1613_v9  ;;  %v846_v43 = vadd.f32 %v718_v62, %v462_v14  ;;  %v850_v47 = vadd.f32 %v722_v38, %v466_v15  ;;  %v613_v38 = vld [vmem:[#allocation6 + $0x278] sm:$0xff]  ;;  %v470_v3 = vld [vmem:[#allocation3 + $0x200] sm:$0xff]  ;;  %v479_v14 = vld [vmem:[#allocation3 + $0x248] sm:$0xff] }
  0xe6   :  { %1140 = vmatprep.subr.bf16.mxu1 %v1139_v18  ;;  %1204 = vmatprep.subr.bf16.mxu0 %v1203_v28  ;;  %v848_v49 = vadd.f32 %v720_v31, %v464_v16  ;;  %v852_v26 = vadd.f32 %v724_v23, %v468_v19  ;;  %v855_v50 = vadd.f32 %v727_v7, %v471_v20  ;;  %v483_v15 = vld [vmem:[#allocation3 + $0x268] sm:$0xff]  ;;  %v485_v18 = vld [vmem:[#allocation3 + $0x278] sm:$0xff]  ;;  %v610_v19 = vld [vmem:[#allocation6 + $0x260] sm:$0xff] }
  0xe7   :  { %v859_v51 = vadd.f32 %v731_v6, %v475_v21  ;;  %v357_v53 = vmul.f32 %v1505_v42, %v1611_v8  ;;  %v353_v55 = vmul.f32 %v1505_v42, %v1613_v9  ;;  %v857_v56 = vadd.f32 %v729_v17, %v473_v12  ;;  %v481_v17 = vld [vmem:[#allocation3 + $0x258] sm:$0xff]  ;;  %v608_v28 = vld [vmem:[#allocation6 + $0x250] sm:$0xff] }
  0xe8   :  { %v861_v36 = vadd.f32 %v733_v2, %v477_v29  ;;  %v730_v57 = vmul.f32 %v602_v30, %v346_v1  ;;  %v732_v37 = vmul.f32 %v604_v48, %v348_v24  ;;  %v726_v60 = vmul.f32 %v598_v25, %v342_v27  ;;  %v612_v27 = vld [vmem:[#allocation6 + $0x270] sm:$0xff] }
  0xe9   :  { %v728_v61 = vmul.f32 %v600_v22, %v344_v11  ;;  %v1141_v62 = vpack.c.bf16 %v850_v47, %v846_v43  ;;  %v739_v23 = vmul.f32 %v611_v52, %v355_v33  ;;  %v735_v31 = vmul.f32 %v607_v54, %v351_v41  ;;  %v606_v11 = vld [vmem:[#allocation6 + $0x240] sm:$0xff]  ;;  %v619_v33 = vld [vmem:[#allocation6 + $0x2a8] sm:$0xff] }
  0xea   :  { %v1205_v45 = vpack.c.bf16 %v852_v26, %v848_v49  ;;  %v1143_v0 = vpack.c.bf16 %v859_v51, %v855_v50  ;;  %v354_v5 = vmul.f32 %v1509_v44, %v1611_v8  ;;  %v741_v6 = vmul.f32 %v613_v38, %v357_v53  ;;  %v615_v43 = vld [vmem:[#allocation6 + $0x288] sm:$0xff]  ;;  %v621_v49 = vld [vmem:[#allocation6 + $0x2b8] sm:$0xff] }
  0xeb   :  { %v737_v7 = vmul.f32 %v609_v58, %v353_v55  ;;  %v1207_v10 = vpack.c.bf16 %v861_v36, %v857_v56  ;;  %v356_v16 = vmul.f32 %v1511_v46, %v1611_v8  ;;  %v350_v1 = vmul.f32 %v1509_v44, %v1613_v9  ;;  %v617_v26 = vld [vmem:[#allocation6 + $0x298] sm:$0xff]  ;;  %v1647_v56 = vpop.permute.xlu1 %214  ;;  %v1649_v36 = vpop.permute.xlu0 %209  ;;  %v478_v58 = vld [vmem:[#allocation3 + $0x240] sm:$0xff] }
  0xec   :  { %v352_v2 = vmul.f32 %v1511_v46, %v1613_v9  ;;  %v363_v20 = vmul.f32 %v1502_v40, %v1627_v32  ;;  %v359_v21 = vmul.f32 %v1502_v40, %v1629_v63  ;;  %v854_v24 = vadd.f32 %v726_v60, %v470_v3  ;;  %v480_v60 = vld [vmem:[#allocation3 + $0x250] sm:$0xff]  ;;  %v491_v3 = vld [vmem:[#allocation3 + $0x2a8] sm:$0xff] }
  0xed   :  { %1142 = vmatpush1.bf16.xpose.msra.mxu1 %v1141_v62  ;;  %1206 = vmatpush1.bf16.xpose.msra.mxu0 %v1205_v45  ;;  %v858_v8 = vadd.f32 %v730_v57, %v474_v4  ;;  %v856_v12 = vadd.f32 %v728_v61, %v472_v59  ;;  %v860_v29 = vadd.f32 %v732_v37, %v476_v13  ;;  %v482_v37 = vld [vmem:[#allocation3 + $0x260] sm:$0xff]  ;;  %v484_v45 = vld [vmem:[#allocation3 + $0x270] sm:$0xff] }
  0xee   :  { %1144 = vmatprep.subr.bf16.mxu1 %v1143_v0  ;;  %1208 = vmatprep.subr.bf16.mxu0 %v1207_v10  ;;  %v863_v9 = vadd.f32 %v735_v31, %v479_v14  ;;  %v867_v30 = vadd.f32 %v739_v23, %v483_v15  ;;  %v365_v41 = vmul.f32 %v1505_v42, %v1627_v32  ;;  %v487_v0 = vld [vmem:[#allocation3 + $0x288] sm:$0xff]  ;;  %v618_v10 = vld [vmem:[#allocation6 + $0x2a0] sm:$0xff] }
  0xef   :  { %v361_v47 = vmul.f32 %v1505_v42, %v1629_v63  ;;  %v865_v48 = vadd.f32 %v737_v7, %v481_v17  ;;  %v869_v25 = vadd.f32 %v741_v6, %v485_v18  ;;  %v738_v22 = vmul.f32 %v610_v19, %v354_v5  ;;  %v489_v6 = vld [vmem:[#allocation3 + $0x298] sm:$0xff] }
  0xf0   :  { %v740_v50 = vmul.f32 %v612_v27, %v356_v16  ;;  %v734_v51 = vmul.f32 %v606_v11, %v350_v1  ;;  %v736_v52 = vmul.f32 %v608_v28, %v352_v2  ;;  %v1145_v53 = vpack.c.bf16 %v858_v8, %v854_v24  ;;  %v493_v7 = vld [vmem:[#allocation3 + $0x2b8] sm:$0xff]  ;;  %v620_v16 = vld [vmem:[#allocation6 + $0x2b0] sm:$0xff]  ;;  %v614_v1 = vld [vmem:[#allocation6 + $0x280] sm:$0xff] }
  0xf1   :  { %v747_v54 = vmul.f32 %v619_v33, %v363_v20  ;;  %v743_v55 = vmul.f32 %v615_v43, %v359_v21  ;;  %v1209_v57 = vpack.c.bf16 %v860_v29, %v856_v12  ;;  %v1147_v38 = vpack.c.bf16 %v867_v30, %v863_v9  ;;  %v616_v2 = vld [vmem:[#allocation6 + $0x290] sm:$0xff]  ;;  %v627_v20 = vld [vmem:[#allocation6 + $0x2e8] sm:$0xff]  ;;  %v629_v12 = vld [vmem:[#allocation6 + $0x2f8] sm:$0xff] }
  0xf2   :  { %v362_v61 = vmul.f32 %v1509_v44, %v1627_v32  ;;  %v749_v62 = vmul.f32 %v621_v49, %v365_v41  ;;  %v745_v23 = vmul.f32 %v617_v26, %v361_v47  ;;  %v1211_v31 = vpack.c.bf16 %v869_v25, %v865_v48  ;;  %v623_v24 = vld [vmem:[#allocation6 + $0x2c8] sm:$0xff]  ;;  %v625_v29 = vld [vmem:[#allocation6 + $0x2d8] sm:$0xff]  ;;  %v1667_v48 = vpop.permute.xlu1 %224  ;;  %v1669_v25 = vpop.permute.xlu0 %219  ;;  %v486_v26 = vld [vmem:[#allocation3 + $0x280] sm:$0xff] }
  0xf3   :  { %v364_v4 = vmul.f32 %v1511_v46, %v1627_v32  ;;  %v358_v59 = vmul.f32 %v1509_v44, %v1629_v63  ;;  %v360_v5 = vmul.f32 %v1511_v46, %v1629_v63  ;;  %v371_v13 = vmul.f32 %v1502_v40, %v1647_v56 }
  0xf4   :  { %v367_v14 = vmul.f32 %v1502_v40, %v1649_v36  ;;  %v862_v15 = vadd.f32 %v734_v51, %v478_v58  ;;  %v866_v32 = vadd.f32 %v738_v22, %v482_v37  ;;  %v864_v17 = vadd.f32 %v736_v52, %v480_v60  ;;  %v488_v51 = vld [vmem:[#allocation3 + $0x290] sm:$0xff]  ;;  %v499_v58 = vld [vmem:[#allocation3 + $0x2e8] sm:$0xff] }
  0xf5   :  { %1146 = vmatpush1.bf16.xpose.msra.mxu1 %v1145_v53  ;;  %1210 = vmatpush1.bf16.xpose.msra.mxu0 %v1209_v57  ;;  %v868_v18 = vadd.f32 %v740_v50, %v484_v45  ;;  %v871_v63 = vadd.f32 %v743_v55, %v487_v0  ;;  %v875_v19 = vadd.f32 %v747_v54, %v491_v3  ;;  %v490_v50 = vld [vmem:[#allocation3 + $0x2a0] sm:$0xff]  ;;  %v492_v57 = vld [vmem:[#allocation3 + $0x2b0] sm:$0xff] }
  0xf6   :  { %1148 = vmatprep.subr.bf16.mxu1 %v1147_v38  ;;  %1212 = vmatprep.subr.bf16.mxu0 %v1211_v31  ;;  %v373_v21 = vmul.f32 %v1505_v42, %v1647_v56  ;;  %v369_v8 = vmul.f32 %v1505_v42, %v1649_v36  ;;  %v873_v27 = vadd.f32 %v745_v23, %v489_v6  ;;  %v495_v38 = vld [vmem:[#allocation3 + $0x2c8] sm:$0xff]  ;;  %v501_v23 = vld [vmem:[#allocation3 + $0x2f8] sm:$0xff]  ;;  %v626_v31 = vld [vmem:[#allocation6 + $0x2e0] sm:$0xff] }
  0xf7   :  { %v877_v11 = vadd.f32 %v749_v62, %v493_v7  ;;  %v746_v28 = vmul.f32 %v618_v10, %v362_v61  ;;  %v748_v9 = vmul.f32 %v620_v16, %v364_v4  ;;  %v742_v30 = vmul.f32 %v614_v1, %v358_v59  ;;  %v497_v62 = vld [vmem:[#allocation3 + $0x2d8] sm:$0xff]  ;;  %v628_v4 = vld [vmem:[#allocation6 + $0x2f0] sm:$0xff]  ;;  %v622_v59 = vld [vmem:[#allocation6 + $0x2c0] sm:$0xff] }
  0xf8   :  { %v744_v33 = vmul.f32 %v616_v2, %v360_v5  ;;  %v1149_v41 = vpack.c.bf16 %v866_v32, %v862_v15  ;;  %v755_v43 = vmul.f32 %v627_v20, %v371_v13  ;;  %v751_v47 = vmul.f32 %v623_v24, %v367_v14  ;;  %v624_v5 = vld [vmem:[#allocation6 + $0x2d0] sm:$0xff]  ;;  %v635_v13 = vld [vmem:[#allocation6 + $0x328] sm:$0xff] }
  0xf9   :  { %v1213_v22 = vpack.c.bf16 %v868_v18, %v864_v17  ;;  %v1151_v49 = vpack.c.bf16 %v875_v19, %v871_v63  ;;  %v370_v52 = vmul.f32 %v1509_v44, %v1647_v56  ;;  %v757_v53 = vmul.f32 %v629_v12, %v373_v21  ;;  %v631_v15 = vld [vmem:[#allocation6 + $0x308] sm:$0xff]  ;;  %v637_v17 = vld [vmem:[#allocation6 + $0x338] sm:$0xff] }
  0xfa   :  { %v753_v54 = vmul.f32 %v625_v29, %v369_v8  ;;  %v1215_v55 = vpack.c.bf16 %v877_v11, %v873_v27  ;;  %v372_v37 = vmul.f32 %v1511_v46, %v1647_v56  ;;  %v366_v60 = vmul.f32 %v1509_v44, %v1649_v36  ;;  %v633_v18 = vld [vmem:[#allocation6 + $0x318] sm:$0xff]  ;;  %v1687_v27 = vpop.permute.xlu1 %234  ;;  %v1689_v11 = vpop.permute.xlu0 %229  ;;  %v494_v29 = vld [vmem:[#allocation3 + $0x2c0] sm:$0xff] }
  0xfb   :  { %v368_v61 = vmul.f32 %v1511_v46, %v1649_v36  ;;  %v379_v45 = vmul.f32 %v1502_v40, %v1667_v48  ;;  %v375_v0 = vmul.f32 %v1502_v40, %v1669_v25  ;;  %v870_v3 = vadd.f32 %v742_v30, %v486_v26  ;;  %v496_v30 = vld [vmem:[#allocation3 + $0x2d0] sm:$0xff]  ;;  %v507_v26 = vld [vmem:[#allocation3 + $0x328] sm:$0xff] }
  0xfc   :  { %v874_v56 = vadd.f32 %v746_v28, %v490_v50  ;;  %v872_v6 = vadd.f32 %v744_v33, %v488_v51  ;;  %v876_v7 = vadd.f32 %v748_v9, %v492_v57  ;;  %v879_v36 = vadd.f32 %v751_v47, %v495_v38  ;;  %v498_v9 = vld [vmem:[#allocation3 + $0x2e0] sm:$0xff] }
  0xfd   :  { %1150 = vmatpush1.bf16.xpose.msra.mxu1 %v1149_v41  ;;  %1214 = vmatpush1.bf16.xpose.msra.mxu0 %v1213_v22  ;;  %v883_v10 = vadd.f32 %v755_v43, %v499_v58  ;;  %v381_v14 = vmul.f32 %v1505_v42, %v1667_v48  ;;  %v377_v32 = vmul.f32 %v1505_v42, %v1669_v25  ;;  %v500_v22 = vld [vmem:[#allocation3 + $0x2f0] sm:$0xff] }
  0xfe   :  { %1152 = vmatprep.subr.bf16.mxu1 %v1151_v49  ;;  %1216 = vmatprep.subr.bf16.mxu0 %v1215_v55  ;;  %v881_v16 = vadd.f32 %v753_v54, %v497_v62  ;;  %v885_v1 = vadd.f32 %v757_v53, %v501_v23  ;;  %v754_v2 = vmul.f32 %v626_v31, %v370_v52  ;;  %v503_v49 = vld [vmem:[#allocation3 + $0x308] sm:$0xff]  ;;  %v505_v53 = vld [vmem:[#allocation3 + $0x318] sm:$0xff]  ;;  %v634_v55 = vld [vmem:[#allocation6 + $0x320] sm:$0xff] }
  0xff   :  { %v756_v63 = vmul.f32 %v628_v4, %v372_v37  ;;  %v750_v19 = vmul.f32 %v622_v59, %v366_v60  ;;  %v752_v20 = vmul.f32 %v624_v5, %v368_v61  ;;  %v1153_v21 = vpack.c.bf16 %v874_v56, %v870_v3  ;;  %v509_v54 = vld [vmem:[#allocation3 + $0x338] sm:$0xff]  ;;  %v636_v37 = vld [vmem:[#allocation6 + $0x330] sm:$0xff]  ;;  %v630_v60 = vld [vmem:[#allocation6 + $0x300] sm:$0xff] }
 0x100   :  { %v763_v24 = vmul.f32 %v635_v13, %v379_v45  ;;  %v759_v8 = vmul.f32 %v631_v15, %v375_v0  ;;  %v1217_v28 = vpack.c.bf16 %v876_v7, %v872_v6  ;;  %v1155_v12 = vpack.c.bf16 %v883_v10, %v879_v36  ;;  %v632_v61 = vld [vmem:[#allocation6 + $0x310] sm:$0xff]  ;;  %v643_v45 = vld [vmem:[#allocation6 + $0x368] sm:$0xff]  ;;  %v645_v6 = vld [vmem:[#allocation6 + $0x378] sm:$0xff] }
 0x101   :  { %v378_v33 = vmul.f32 %v1509_v44, %v1667_v48  ;;  %v765_v41 = vmul.f32 %v637_v17, %v381_v14  ;;  %v761_v43 = vmul.f32 %v633_v18, %v377_v32  ;;  %v1219_v47 = vpack.c.bf16 %v885_v1, %v881_v16  ;;  %v639_v3 = vld [vmem:[#allocation6 + $0x348] sm:$0xff]  ;;  %v641_v7 = vld [vmem:[#allocation6 + $0x358] sm:$0xff]  ;;  %v1707_v16 = vpop.permute.xlu1 %244  ;;  %v1709_v1 = vpop.permute.xlu0 %239  ;;  %v502_v18 = vld [vmem:[#allocation3 + $0x300] sm:$0xff] }
 0x102   :  { %v380_v50 = vmul.f32 %v1511_v46, %v1667_v48  ;;  %v374_v51 = vmul.f32 %v1509_v44, %v1669_v25  ;;  %v376_v52 = vmul.f32 %v1511_v46, %v1669_v25  ;;  %v387_v57 = vmul.f32 %v1502_v40, %v1687_v27 }
 0x103   :  { %v383_v38 = vmul.f32 %v1502_v40, %v1689_v11  ;;  %v878_v58 = vadd.f32 %v750_v19, %v494_v29  ;;  %v882_v48 = vadd.f32 %v754_v2, %v498_v9  ;;  %v880_v62 = vadd.f32 %v752_v20, %v496_v30  ;;  %v504_v19 = vld [vmem:[#allocation3 + $0x310] sm:$0xff]  ;;  %v515_v29 = vld [vmem:[#allocation3 + $0x368] sm:$0xff] }
 0x104   :  { %v884_v23 = vadd.f32 %v756_v63, %v500_v22  ;;  %v887_v25 = vadd.f32 %v759_v8, %v503_v49  ;;  %v891_v31 = vadd.f32 %v763_v24, %v507_v26  ;;  %v389_v0 = vmul.f32 %v1505_v42, %v1687_v27  ;;  %v506_v63 = vld [vmem:[#allocation3 + $0x320] sm:$0xff] }
 0x105   :  { %1154 = vmatpush1.bf16.xpose.msra.mxu1 %v1153_v21  ;;  %1218 = vmatpush1.bf16.xpose.msra.mxu0 %v1217_v28  ;;  %v385_v56 = vmul.f32 %v1505_v42, %v1689_v11  ;;  %v889_v4 = vadd.f32 %v761_v43, %v505_v53  ;;  %v893_v59 = vadd.f32 %v765_v41, %v509_v54  ;;  %v508_v28 = vld [vmem:[#allocation3 + $0x330] sm:$0xff]  ;;  %v513_v41 = vld [vmem:[#allocation3 + $0x358] sm:$0xff] }
 0x106   :  { %1156 = vmatprep.subr.bf16.mxu1 %v1155_v12  ;;  %1220 = vmatprep.subr.bf16.mxu0 %v1219_v47  ;;  %v762_v5 = vmul.f32 %v634_v55, %v378_v33  ;;  %v764_v36 = vmul.f32 %v636_v37, %v380_v50  ;;  %v758_v10 = vmul.f32 %v630_v60, %v374_v51  ;;  %v511_v12 = vld [vmem:[#allocation3 + $0x348] sm:$0xff]  ;;  %v517_v43 = vld [vmem:[#allocation3 + $0x378] sm:$0xff]  ;;  %v642_v47 = vld [vmem:[#allocation6 + $0x360] sm:$0xff] }
 0x107   :  { %v760_v13 = vmul.f32 %v632_v61, %v376_v52  ;;  %v1157_v14 = vpack.c.bf16 %v882_v48, %v878_v58  ;;  %v771_v15 = vmul.f32 %v643_v45, %v387_v57  ;;  %v767_v32 = vmul.f32 %v639_v3, %v383_v38  ;;  %v644_v50 = vld [vmem:[#allocation6 + $0x370] sm:$0xff]  ;;  %v638_v51 = vld [vmem:[#allocation6 + $0x340] sm:$0xff]  ;;  %v651_v57 = vld [vmem:[#allocation6 + $0x3a8] sm:$0xff] }
 0x108   :  { %v1221_v2 = vpack.c.bf16 %v884_v23, %v880_v62  ;;  %v1159_v17 = vpack.c.bf16 %v891_v31, %v887_v25  ;;  %v386_v20 = vmul.f32 %v1509_v44, %v1687_v27  ;;  %v773_v21 = vmul.f32 %v645_v6, %v389_v0  ;;  %v640_v52 = vld [vmem:[#allocation6 + $0x350] sm:$0xff]  ;;  %v647_v58 = vld [vmem:[#allocation6 + $0x388] sm:$0xff]  ;;  %v653_v62 = vld [vmem:[#allocation6 + $0x3b8] sm:$0xff] }
 0x109   :  { %v769_v24 = vmul.f32 %v641_v7, %v385_v56  ;;  %v1223_v8 = vpack.c.bf16 %v893_v59, %v889_v4  ;;  %v388_v9 = vmul.f32 %v1511_v46, %v1687_v27  ;;  %v382_v30 = vmul.f32 %v1509_v44, %v1689_v11  ;;  %v649_v23 = vld [vmem:[#allocation6 + $0x398] sm:$0xff]  ;;  %v1727_v4 = vpop.permute.xlu1 %254  ;;  %v1729_v59 = vpop.permute.xlu0 %249  ;;  %v510_v7 = vld [vmem:[#allocation3 + $0x340] sm:$0xff] }
 0x10a   :  { %v384_v33 = vmul.f32 %v1511_v46, %v1689_v11  ;;  %v395_v22 = vmul.f32 %v1502_v40, %v1707_v16  ;;  %v391_v49 = vmul.f32 %v1502_v40, %v1709_v1  ;;  %v886_v26 = vadd.f32 %v758_v10, %v502_v18  ;;  %v512_v10 = vld [vmem:[#allocation3 + $0x350] sm:$0xff]  ;;  %v523_v18 = vld [vmem:[#allocation3 + $0x3a8] sm:$0xff] }
 0x10b   :  { %v890_v27 = vadd.f32 %v762_v5, %v506_v63  ;;  %v888_v53 = vadd.f32 %v760_v13, %v504_v19  ;;  %v892_v54 = vadd.f32 %v764_v36, %v508_v28  ;;  %v895_v11 = vadd.f32 %v767_v32, %v511_v12  ;;  %v514_v36 = vld [vmem:[#allocation3 + $0x360] sm:$0xff] }
 0x10c   :  { %v899_v55 = vadd.f32 %v771_v15, %v515_v29  ;;  %v397_v38 = vmul.f32 %v1505_v42, %v1707_v16  ;;  %v393_v48 = vmul.f32 %v1505_v42, %v1709_v1  ;;  %v897_v37 = vadd.f32 %v769_v24, %v513_v41  ;;  %v525_v24 = vld [vmem:[#allocation3 + $0x3b8] sm:$0xff] }
 0x10d   :  { %1158 = vmatpush1.bf16.xpose.msra.mxu1 %v1157_v14  ;;  %1222 = vmatpush1.bf16.xpose.msra.mxu0 %v1221_v2  ;;  %v901_v60 = vadd.f32 %v773_v21, %v517_v43  ;;  %v770_v61 = vmul.f32 %v642_v47, %v386_v20  ;;  %v772_v25 = vmul.f32 %v644_v50, %v388_v9  ;;  %v516_v2 = vld [vmem:[#allocation3 + $0x370] sm:$0xff]  ;;  %v521_v21 = vld [vmem:[#allocation3 + $0x398] sm:$0xff] }
 0x10e   :  { %1160 = vmatprep.subr.bf16.mxu1 %v1159_v17  ;;  %1224 = vmatprep.subr.bf16.mxu0 %v1223_v8  ;;  %v766_v31 = vmul.f32 %v638_v51, %v382_v30  ;;  %v768_v45 = vmul.f32 %v640_v52, %v384_v33  ;;  %v1161_v0 = vpack.c.bf16 %v890_v27, %v886_v26  ;;  %v519_v17 = vld [vmem:[#allocation3 + $0x388] sm:$0xff]  ;;  %v650_v8 = vld [vmem:[#allocation6 + $0x3a0] sm:$0xff]  ;;  %v652_v9 = vld [vmem:[#allocation6 + $0x3b0] sm:$0xff] }
 0x10f   :  { %v779_v3 = vmul.f32 %v651_v57, %v395_v22  ;;  %v775_v56 = vmul.f32 %v647_v58, %v391_v49  ;;  %v1225_v5 = vpack.c.bf16 %v892_v54, %v888_v53  ;;  %v1163_v6 = vpack.c.bf16 %v899_v55, %v895_v11  ;;  %v646_v30 = vld [vmem:[#allocation6 + $0x380] sm:$0xff]  ;;  %v648_v33 = vld [vmem:[#allocation6 + $0x390] sm:$0xff]  ;;  %v659_v22 = vld [vmem:[#allocation6 + $0x3e8] sm:$0xff] }
 0x110   :  { %v394_v13 = vmul.f32 %v1509_v44, %v1707_v16  ;;  %v781_v14 = vmul.f32 %v653_v62, %v397_v38  ;;  %v777_v15 = vmul.f32 %v649_v23, %v393_v48  ;;  %v1227_v32 = vpack.c.bf16 %v901_v60, %v897_v37  ;;  %v655_v26 = vld [vmem:[#allocation6 + $0x3c8] sm:$0xff]  ;;  %v661_v52 = vld [vmem:[#allocation6 + $0x3f8] sm:$0xff]  ;;  %v518_v60 = vld [vmem:[#allocation3 + $0x380] sm:$0xff] }
 0x111   :  { %v396_v63 = vmul.f32 %v1511_v46, %v1707_v16  ;;  %v390_v19 = vmul.f32 %v1509_v44, %v1709_v1  ;;  %v392_v20 = vmul.f32 %v1511_v46, %v1709_v1  ;;  %v403_v28 = vmul.f32 %v1502_v40, %v1727_v4  ;;  %v657_v53 = vld [vmem:[#allocation6 + $0x3d8] sm:$0xff]  ;;  %v520_v62 = vld [vmem:[#allocation3 + $0x390] sm:$0xff] }
 0x112   :  { %v399_v12 = vmul.f32 %v1502_v40, %v1729_v59  ;;  %v894_v29 = vadd.f32 %v766_v31, %v510_v7  ;;  %v898_v16 = vadd.f32 %v770_v61, %v514_v36  ;;  %v896_v41 = vadd.f32 %v768_v45, %v512_v10  ;;  %v522_v61 = vld [vmem:[#allocation3 + $0x3a0] sm:$0xff]  ;;  %v524_v31 = vld [vmem:[#allocation3 + $0x3b0] sm:$0xff]  ;;  %v527_v45 = vld [vmem:[#allocation3 + $0x3c8] sm:$0xff] }
 0x113   :  { %v900_v43 = vadd.f32 %v772_v25, %v516_v2  ;;  %v903_v1 = vadd.f32 %v775_v56, %v519_v17  ;;  %v907_v47 = vadd.f32 %v779_v3, %v523_v18  ;;  %v405_v49 = vmul.f32 %v1505_v42, %v1727_v4 }
 0x114   :  { %v401_v27 = vmul.f32 %v1505_v42, %v1729_v59  ;;  %v905_v50 = vadd.f32 %v777_v15, %v521_v21  ;;  %v909_v40 = vadd.f32 %v781_v14, %v525_v24  ;;  %v778_v51 = vmul.f32 %v650_v8, %v394_v13  ;;  %v658_v14 = vld [vmem:[#allocation6 + $0x3e0] sm:$0xff] }
 0x115   :  { %1162 = vmatpush1.bf16.xpose.msra.mxu1 %v1161_v0  ;;  %1226 = vmatpush1.bf16.xpose.msra.mxu0 %v1225_v5  ;;  %v780_v54 = vmul.f32 %v652_v9, %v396_v63  ;;  %v774_v11 = vmul.f32 %v646_v30, %v390_v19  ;;  %v776_v55 = vmul.f32 %v648_v33, %v392_v20  ;;  %v531_v0 = vld [vmem:[#allocation3 + $0x3e8] sm:$0xff]  ;;  %v529_v5 = vld [vmem:[#allocation3 + $0x3d8] sm:$0xff]  ;;  %v654_v15 = vld [vmem:[#allocation6 + $0x3c0] sm:$0xff] }
 0x116   :  { %1164 = vmatprep.subr.bf16.mxu1 %v1163_v6  ;;  %1228 = vmatprep.subr.bf16.mxu0 %v1227_v32  ;;  %v1165_v57 = vpack.c.bf16 %v898_v16, %v894_v29  ;;  %v787_v38 = vmul.f32 %v659_v22, %v403_v28  ;;  %v783_v58 = vmul.f32 %v655_v26, %v399_v12  ;;  %v533_v6 = vld [vmem:[#allocation3 + $0x3f8] sm:$0xff]  ;;  %v656_v63 = vld [vmem:[#allocation6 + $0x3d0] sm:$0xff]  ;;  %v530_v29 = vld [vmem:[#allocation3 + $0x3e0] sm:$0xff] }
 0x117   :  { %v1229_v48 = vpack.c.bf16 %v900_v43, %v896_v41  ;;  %v1167_v37 = vpack.c.bf16 %v907_v47, %v903_v1  ;;  %v789_v23 = vmul.f32 %v661_v52, %v405_v49  ;;  %v785_v25 = vmul.f32 %v657_v53, %v401_v27  ;;  %v528_v9 = vld [vmem:[#allocation3 + $0x3d0] sm:$0xff]  ;;  %v920_v49 = vld [vmem:[%s1786_s0] sm:$0xff] }
 0x118   :  { %v1231_v42 = vpack.c.bf16 %v909_v40, %v905_v50  ;;  %v402_v3 = vmul.f32 %v1509_v44, %v1727_v4  ;;  %v404_v56 = vmul.f32 %v1511_v46, %v1727_v4  ;;  %v398_v7 = vmul.f32 %v1509_v44, %v1729_v59  ;;  %v660_v4 = vld [vmem:[#allocation6 + $0x3f0] sm:$0xff]  ;;  %v1074_v27 = vld [vmem:[%s1792_s6] sm:$0x3] }
 0x119   :  { %v400_v36 = vmul.f32 %v1511_v46, %v1729_v59  ;;  %v902_v10 = vadd.f32 %v774_v11, %v518_v60  ;;  %v906_v13 = vadd.f32 %v778_v51, %v522_v61  ;;  %v904_v32 = vadd.f32 %v776_v55, %v520_v62  ;;  %v526_v59 = vld [vmem:[#allocation3 + $0x3c0] sm:$0xff]  ;;  %v532_v30 = vld [vmem:[#allocation3 + $0x3f0] sm:$0xff] }
 0x11a   :  { %v908_v2 = vadd.f32 %v780_v54, %v524_v31  ;;  %v911_v17 = vadd.f32 %v783_v58, %v527_v45  ;;  %v915_v18 = vadd.f32 %v787_v38, %v531_v0  ;;  %v913_v19 = vadd.f32 %v785_v25, %v529_v5  ;;  %v922_v26 = vld [vmem:[%s1786_s0 + $0x10] sm:$0xff]  ;;  %v1075_v50 = vld [vmem:[%s1793_s7] sm:$0x3]  ;;  %s1326_s0 = smov [#allocation8]  }
 0x11b   :  { %v917_v20 = vadd.f32 %v789_v23, %v533_v6  ;;  %v786_v21 = vmul.f32 %v658_v14, %v402_v3  ;;  %v782_v24 = vmul.f32 %v654_v15, %v398_v7  ;;  %v1169_v8 = vpack.c.bf16 %v906_v13, %v902_v10  ;;  %v1073_v51 = vld [vmem:[%s1791_s5] sm:$0x3]  ;;  %s1101_s6 = sshll.u32 %s1326_s0, 4  ;;  %s1102_s6 = int_to_ptr.vmem [resolvable:$true] %s1101_s6 }
 0x11c   :  { %v788_v44 = vmul.f32 %v660_v4, %v404_v56  ;;  %v784_v28 = vmul.f32 %v656_v63, %v400_v36  ;;  %v1233_v12 = vpack.c.bf16 %v908_v2, %v904_v32  ;;  %v1171_v46 = vpack.c.bf16 %v915_v18, %v911_v17  ;;  %s1293_s5 = scalar_lea.vmem %s1102_s6, 256  ;;  %p1298_p3 = scmp.lt.s32.totalorder %s1102_s6, %s1102_s6 }
 0x11d   :  { %1166 = vmatpush1.bf16.xpose.msra.mxu1 %v1165_v57  ;;  %1230 = vmatpush1.bf16.xpose.msra.mxu0 %v1229_v48  ;;  %v1235_v16 = vpack.c.bf16 %v917_v20, %v913_v19  ;;  %v910_v33 = vadd.f32 %v782_v24, %v526_v59  ;;  %v914_v41 = vadd.f32 %v786_v21, %v530_v29  ;;  %p1294_p2 = scmp.ne.s32.totalorder %s1102_s6, %s1293_s5  ;;  %p1299_p4 = scmp.lt.s32.totalorder %s1293_s5, %s1293_s5 }
 0x11e   :  { %1168 = vmatprep.subr.bf16.mxu1 %v1167_v37  ;;  %1232 = vmatprep.subr.bf16.mxu0 %v1231_v42  ;;  %v912_v43 = vadd.f32 %v784_v28, %v528_v9  ;;  %v916_v1 = vadd.f32 %v788_v44, %v532_v30  ;;  %v1076_v40 = vmul.f32 %v1075_v50, %v1074_v27 }
 0x11f   :  { %v1173_v47 = vpack.c.bf16 %v914_v41, %v910_v33  ;;  %p1300_p5 = por %p1299_p4, %p1298_p3 }
 0x120   :  { %v1237_v22 = vpack.c.bf16 %v916_v1, %v912_v43  ;;  %v1077_v52 = vadd.f32 %v1076_v40, %v1073_v51 }
 0x121   :  { %p1301_p6 = pnand %p1300_p5, %p1294_p2 }
 0x122   :  { %v1084_v54 = vrot.slane %v1077_v52, %v260_v39  ;;  %v1088_v57 = vrot.slane %v1077_v52, %v264_v35 }
 0x125   :  { %1170 = vmatpush1.bf16.xpose.msra.mxu1 %v1169_v8  ;;  %1234 = vmatpush1.bf16.xpose.msra.mxu0 %v1233_v12 }
 0x126   :  { %1172 = vmatprep.subr.bf16.mxu1 %v1171_v46  ;;  %1236 = vmatprep.subr.bf16.mxu0 %v1235_v16 }
 0x12d   :  { %1174 = vmatpush1.bf16.xpose.msra.mxu1 %v1173_v47  ;;  %1238 = vmatpush1.bf16.xpose.msra.mxu0 %v1237_v22 }
 0x134   :  { %989 = vmatmul.mubr.f32.vlgmr.msra.gmra.mrb[0].mxu1 %v920_v49  ;;  %1060 = vmatmul.mubr.f32.vlgmr.msra.gmra.mrb[0].mxu0 %v922_v26 }
 0x207   :  { %v990_v53 = vpop.f32.mrb[0].mxu1  ;;  %v1061_v11 = vpop.f32.mrb[0].mxu0 }
 0x208   :  { %v992_v55 = vpop.f32.mrb[1].mxu1  ;;  %v1062_v38 = vadd.f32 %v1061_v11, %v990_v53  ;;  %v1063_v58 = vpop.f32.mrb[1].mxu0 }
 0x209   :  { %v1064_v48 = vadd.f32 %v1063_v58, %v992_v55 }
 0x20a   :  { %v1091_v37 = vadd.f32 %v1084_v54, %v1062_v38 }
 0x20b   :  { %v1092_v60 = vadd.f32 %v1088_v57, %v1064_v48 }
 0x20c   :  { %1093 = vst [vmem:[#allocation8] sm:$0xff] %v1091_v37 }
 0x20d   :  { %1094 = vst [vmem:[#allocation8 + $0x8] sm:$0xff] %v1092_v60 }
 0x20e   :  { %1304 = shalt.err (!%p1301_p6)
}
 0x20f   :  { %s1305_s14 = scalar_lea.hbm %s1794_s8, 256 }
 0x210   :  { %p1306_p7 = scmp.ne.s32.totalorder %s1794_s8, %s1305_s14  ;;  %p1309_p8 = scmp.lt.u32.totalorder %s1305_s14, %s1794_s8 }
 0x212   :  { %p1311_p9 = pnand %p1309_p8, %p1306_p7 }
 0x214   :  { %1314 = shalt.err (!%p1311_p9)
}
 0x215   :  { %1104 = dma.vmem_to_hbm [thread:$0]  %s1102_s6, 256, %s1794_s8, [#allocation5]  }
 0x216   :  { %1319 = dma.done.wait [#allocation5], 256  }
 0x217   :  { %1320 = vsyncadd [#allocation5], 4294967040 }
 0x218   :  { %1108 = vsyncpa [#allocation4], 1 }
 0x219   :  { %1109 = vsyncpa [#allocation7], 1 }
 0x21a   :  { %1110 = vsyncpa [#allocation5], 1 }

</bundles_post_ra>
